<compile_context>
chip_gen: v5e
topology: v5e:2x2
jax: 0.10.0
libtpu: 0.0.40
codegen_flags: <defaults>
</compile_context>

<pallas_src>
import jax
import jax.numpy as jnp
from jax.experimental import pallas as pl
from jax.experimental.pallas import tpu as pltpu


def _mlp_logsoftmax_kernel(x_ref, w1_ref, b1_ref, w2_ref, b2_ref, o_ref):
    # fc1: bf16 inputs on the MXU, f32 accumulation.
    x_bf = x_ref[...].astype(jnp.bfloat16)
    h = jnp.dot(x_bf, w1_ref[...], preferred_element_type=jnp.float32)
    # Bias + ReLU in f32 on the VPU (v5e has no bf16 VPU path).
    h = jnp.maximum(h + b1_ref[...], 0.0)

    # fc2: w2 is tiny (512 x C); upcast it to f32 so the epilogue stays f32.
    logits = jnp.dot(h, w2_ref[...].astype(jnp.float32),
                     preferred_element_type=jnp.float32)
    logits = logits + b2_ref[...]

    # Numerically-stable log_softmax over the class axis (dim 1), all f32.
    m = jnp.max(logits, axis=-1, keepdims=True)
    z = logits - m
    lse = jnp.log(jnp.sum(jnp.exp(z), axis=-1, keepdims=True))
    o_ref[...] = (z - lse).astype(o_ref.dtype)


def prepare_params(w1, b1, w2, b2):
    """One-time parameter prep (hoisted off the per-call hot path).

    Returns (w1_bf16 (1024,512), b1 (1,512) f32, w2_bf16 (512,C), b2 (1,C) f32).
    """
    return (
        w1.astype(jnp.bfloat16),
        b1.reshape(1, -1).astype(jnp.float32),
        w2.astype(jnp.bfloat16),
        b2.reshape(1, -1).astype(jnp.float32),
    )


def _cost_estimate(B, D, H, C):
    flops = 2 * B * D * H + 2 * B * H * C
    bytes_accessed = (B * D * 4          # x (f32)
                      + D * H * 2        # w1 (bf16)
                      + H * C * 2        # w2 (bf16)
                      + H * 4 + C * 4    # biases
                      + B * C * 4)       # output
    transcendentals = B * C + B          # exp per logit + log per row
    return pl.CostEstimate(flops=flops,
                           transcendentals=transcendentals,
                           bytes_accessed=bytes_accessed)


def dummy_fully_conn_sex_classifier(x, w1_bf, b1_2d, w2_bf, b2_2d, *, block_b=512):
    """x: (B, 1024) f32; params from prepare_params(). Returns (B, C) f32."""
    B, D = x.shape
    H = w1_bf.shape[1]
    C = w2_bf.shape[1]
    cost = _cost_estimate(B, D, H, C)

    if B <= block_b:
        # Tiny batch: single grid-less invocation, everything resident in VMEM.
        vmem = pl.BlockSpec(memory_space=pltpu.MemorySpace.VMEM)
        return pl.pallas_call(
            _mlp_logsoftmax_kernel,
            out_shape=jax.ShapeDtypeStruct((B, C), jnp.float32),
            in_specs=[vmem, vmem, vmem, vmem, vmem],
            out_specs=vmem,
            cost_estimate=cost,
        )(x, w1_bf, b1_2d, w2_bf, b2_2d)

    # Large batch: tile the batch axis; weights get constant index_maps so they
    # stay VMEM-resident across batch tiles (DMA'd once, not per tile).
    tb = block_b
    num_tiles = pl.cdiv(B, tb)
    Bp = num_tiles * tb
    x_p = x if Bp == B else jnp.pad(x, ((0, Bp - B), (0, 0)))

    out = pl.pallas_call(
        _mlp_logsoftmax_kernel,
        out_shape=jax.ShapeDtypeStruct((Bp, C), jnp.float32),
        grid=(num_tiles,),
        in_specs=[
            pl.BlockSpec((tb, D), lambda i: (i, 0)),   # x: tiled over batch
            pl.BlockSpec((D, H), lambda i: (0, 0)),    # w1: resident
            pl.BlockSpec((1, H), lambda i: (0, 0)),    # b1: resident
            pl.BlockSpec((H, C), lambda i: (0, 0)),    # w2: resident
            pl.BlockSpec((1, C), lambda i: (0, 0)),    # b2: resident
        ],
        out_specs=pl.BlockSpec((tb, C), lambda i: (i, 0)),
        compiler_params=pltpu.CompilerParams(
            dimension_semantics=("parallel",)),        # v7x: split batch over 2 TCs
        cost_estimate=cost,
    )(x_p, w1_bf, b1_2d, w2_bf, b2_2d)
    return out[:B] if Bp != B else out


def _reference(x, w1_bf, b1_2d, w2_bf, b2_2d):
    """Plain-JAX reference with the same bf16 weight quantization."""
    xb = x.astype(jnp.bfloat16).astype(jnp.float32)
    h = jnp.maximum(xb @ w1_bf.astype(jnp.float32) + b1_2d, 0.0)
    logits = h @ w2_bf.astype(jnp.float32) + b2_2d
    return jax.nn.log_softmax(logits, axis=1)


def _init_params(key, num_classes):
    k1, k2, k3, k4 = jax.random.split(key, 4)
    # Deterministic synthetic init (PyTorch Linear-style uniform bounds).
    lim1 = 1.0 / jnp.sqrt(1024.0)
    lim2 = 1.0 / jnp.sqrt(512.0)
    w1 = jax.random.uniform(k1, (1024, 512), jnp.float32, -lim1, lim1)
    b1 = jax.random.uniform(k2, (512,), jnp.float32, -lim1, lim1)
    w2 = jax.random.uniform(k3, (512, num_classes), jnp.float32, -lim2, lim2)
    b2 = jax.random.uniform(k4, (num_classes,), jnp.float32, -lim2, lim2)
    return w1, b1, w2, b2


if __name__ == "__main__":
    num_classes = 2

    key = jax.random.PRNGKey(0)
    kx_small, kx_large, kp = jax.random.split(key, 3)
    w1, b1, w2, b2 = _init_params(kp, num_classes)
    params = prepare_params(w1, b1, w2, b2)   # bf16 weights, (1, N) f32 biases

    # --- small batch: grid-less path ---
    x_small = jax.random.normal(kx_small, (8, 1024), jnp.float32)
    out_small = jax.block_until_ready(
        dummy_fully_conn_sex_classifier(x_small, *params))
    ref_small = _reference(x_small, *params)
    assert out_small.shape == (8, num_classes)
    assert jnp.allclose(out_small, ref_small, atol=2e-2, rtol=2e-2)

    # --- larger batch: batch-tiled grid path (weights VMEM-resident) ---
    x_large = jax.random.normal(kx_large, (1024, 1024), jnp.float32)
    out_large = jax.block_until_ready(
        dummy_fully_conn_sex_classifier(x_large, *params, block_b=512))
    ref_large = _reference(x_large, *params)
    assert out_large.shape == (1024, num_classes)
    assert jnp.allclose(out_large, ref_large, atol=2e-2, rtol=2e-2)

    # TODO(synk): GradReverse only alters the backward pass (gradient negation);
    # forward is identity, so no kernel-side op is needed. A custom_vjp would be
    # required only for training-time differentiation.
    print("KERNEL_OK")
</pallas_src>

<mosaic_0001>
module attributes {stable_mosaic.version = 11 : i64} {
  func.func @_mlp_logsoftmax_kernel(%arg0: memref<8x1024xf32, #tpu.memory_space<vmem>>, %arg1: memref<1024x512xbf16, #tpu.memory_space<vmem>>, %arg2: memref<1x512xf32, #tpu.memory_space<vmem>>, %arg3: memref<512x2xbf16, #tpu.memory_space<vmem>>, %arg4: memref<1x2xf32, #tpu.memory_space<vmem>>, %arg5: memref<8x2xf32, #tpu.memory_space<vmem>>) attributes {dimension_semantics = [], scalar_prefetch = 0 : i64, scratch_operands = 0 : i64, tpu.core_type = #tpu.core_type<tc>} {
    %c0 = arith.constant 0 : index
    %c0_0 = arith.constant 0 : index
    %0 = vector.load %arg0[%c0, %c0_0] : memref<8x1024xf32, #tpu.memory_space<vmem>>, vector<8x1024xf32>
    %1 = arith.truncf %0 : vector<8x1024xf32> to vector<8x1024xbf16>
    %c0_1 = arith.constant 0 : index
    %c0_2 = arith.constant 0 : index
    %2 = vector.load %arg1[%c0_1, %c0_2] : memref<1024x512xbf16, #tpu.memory_space<vmem>>, vector<1024x512xbf16>
    %cst = arith.constant dense<0.000000e+00> : vector<8x512xf32>
    %3 = tpu.matmul %1, %2, %cst {dimension_numbers = #tpu.dot_dimension_numbers<[1], [0], [0], [1], [0, 0, 1, 1], [], []>} : vector<8x1024xbf16>, vector<1024x512xbf16>, vector<8x512xf32> -> vector<8x512xf32>
    %c0_3 = arith.constant 0 : index
    %c0_4 = arith.constant 0 : index
    %4 = vector.load %arg2[%c0_3, %c0_4] : memref<1x512xf32, #tpu.memory_space<vmem>>, vector<1x512xf32>
    %5 = vector.broadcast %4 : vector<1x512xf32> to vector<8x512xf32>
    %6 = arith.addf %3, %5 : vector<8x512xf32>
    %cst_5 = arith.constant 0.000000e+00 : f32
    %7 = vector.broadcast %cst_5 : f32 to vector<8x512xf32>
    %8 = arith.maximumf %6, %7 : vector<8x512xf32>
    %c0_6 = arith.constant 0 : index
    %c0_7 = arith.constant 0 : index
    %9 = vector.load %arg3[%c0_6, %c0_7] : memref<512x2xbf16, #tpu.memory_space<vmem>>, vector<512x2xbf16>
    %10 = arith.extf %9 : vector<512x2xbf16> to vector<512x2xf32>
    %cst_8 = arith.constant dense<0.000000e+00> : vector<8x2xf32>
    %11 = tpu.matmul %8, %10, %cst_8 {dimension_numbers = #tpu.dot_dimension_numbers<[1], [0], [0], [1], [0, 0, 1, 1], [], []>} : vector<8x512xf32>, vector<512x2xf32>, vector<8x2xf32> -> vector<8x2xf32>
    %c0_9 = arith.constant 0 : index
    %c0_10 = arith.constant 0 : index
    %12 = vector.load %arg4[%c0_9, %c0_10] : memref<1x2xf32, #tpu.memory_space<vmem>>, vector<1x2xf32>
    %13 = vector.broadcast %12 : vector<1x2xf32> to vector<8x2xf32>
    %14 = arith.addf %11, %13 : vector<8x2xf32>
    %cst_11 = arith.constant dense<0xFF800000> : vector<8xf32>
    %15 = vector.multi_reduction <maximumf>, %14, %cst_11 [1] : vector<8x2xf32> to vector<8xf32>
    %16 = vector.shape_cast %15 : vector<8xf32> to vector<8x1xf32>
    %17 = vector.broadcast %16 : vector<8x1xf32> to vector<8x2xf32>
    %18 = arith.subf %14, %17 : vector<8x2xf32>
    %19 = math.exp %18 : vector<8x2xf32>
    %cst_12 = arith.constant dense<0.000000e+00> : vector<8xf32>
    %20 = vector.multi_reduction <add>, %19, %cst_12 [1] : vector<8x2xf32> to vector<8xf32>
    %21 = vector.shape_cast %20 : vector<8xf32> to vector<8x1xf32>
    %22 = math.log %21 : vector<8x1xf32>
    %23 = vector.broadcast %22 : vector<8x1xf32> to vector<8x2xf32>
    %24 = arith.subf %18, %23 : vector<8x2xf32>
    %c0_13 = arith.constant 0 : index
    %c0_14 = arith.constant 0 : index
    %25 = vector.load %arg5[%c0_13, %c0_14] : memref<8x2xf32, #tpu.memory_space<vmem>>, vector<8x2xf32>
    tpu.vector_store %arg5[%c0_13, %c0_14], %24 {strides = array<i32>} : memref<8x2xf32, #tpu.memory_space<vmem>>, vector<8x2xf32>,
    return
  }
}

</mosaic_0001>

<bundles_post_ra>
// kernel: tpu_custom_call.1
= control target key start
LH: loop header
LB: loop body
LE: loop exit
PB: predicated region body
PF: predicated region fallthrough
CT: control target
= control target key end

     0   :  { %10 = vsyncpa [#allocation3], 0  ;;  %s3723_s21 = smov [#allocation2]   ;;  %s3724_s23 = smov 256   ;;  %s3968_s0 = inlined_call_operand.vmem [shape: f32[8,1024], index: 0, kind: input, shape index: {}]   ;;  %s3969_s1 = inlined_call_operand.hbm [shape: bf16[1024,512], index: 1, kind: input, shape index: {}]   ;;  %s3970_s2 = inlined_call_operand.vmem [shape: f32[1,512], index: 2, kind: input, shape index: {}]   ;;  %s3971_s3 = inlined_call_operand.vmem [shape: bf16[512,2], index: 3, kind: input, shape index: {}]   ;;  %s3972_s4 = inlined_call_operand.vmem [shape: f32[1,2], index: 4, kind: input, shape index: {}]   ;;  %s3973_s5 = inlined_call_operand.vmem [shape: f32[8,2], index: 5, kind: output, shape index: {}]  }
   0x1   :  { %s17_s20 = sshll.u32 %s3969_s1, 4  ;;  %s19_s22 = sshll.u32 %s3723_s21, 4  ;;  %s18_s20 = int_to_ptr.hbm [resolvable:$true] %s17_s20  ;;  %s20_s22 = int_to_ptr.vmem [resolvable:$true] %s19_s22 }
   0x2   :  { %s3725_s24 = smov 16  }
   0x3   :  { %25 = dma.hbm_to_vmem [thread:$0]  %s18_s20, 32768, %s20_s22, [#allocation3], %s3724_s23, %s3724_s23, %s3725_s24  }
   0x4   :  { %3721 = dma.done.wait [#allocation3], 32768  }
   0x5   :  { %3722 = vsyncadd [#allocation3], 4294934528  ;;  %v2363_v0 = vld [vmem:[#allocation2 + $0xe0] sm:$0xf]  ;;  %v3303_v1 = vld [vmem:[#allocation2 + $0xec] sm:$0xf0] }
   0x6   :  { %v2491_v2 = vld [vmem:[#allocation2 + $0x1e0] sm:$0xf]  ;;  %v2364_v3 = vor.u32 %v3303_v1, %v2363_v0  ;;  %v3335_v4 = vld [vmem:[#allocation2 + $0x1ec] sm:$0xf0]  ;;  %vm2230_vm0 = vcmask 15360  }
   0x7   :  { %v2619_v5 = vld [vmem:[#allocation2 + $0x2e0] sm:$0xf]  ;;  %v3367_v6 = vld [vmem:[#allocation2 + $0x2ec] sm:$0xf0]  ;;  %v2492_v7 = vor.u32 %v3335_v4, %v2491_v2 }
   0x8   :  { %v2620_v8 = vor.u32 %v3367_v6, %v2619_v5  ;;  %v2747_v9 = vld [vmem:[#allocation2 + $0x3e0] sm:$0xf]  ;;  %v3399_v10 = vld [vmem:[#allocation2 + $0x3ec] sm:$0xf0]  ;;  %1598 = vmatpush.bf16.msra.mxu0 %v2364_v3 }
   0x9   :  { %v2347_v11 = vld [vmem:[#allocation2 + $0xc0] sm:$0xf]  ;;  %v2748_v12 = vor.u32 %v3399_v10, %v2747_v9  ;;  %v3299_v13 = vld [vmem:[#allocation2 + $0xcc] sm:$0xf0]  ;;  %1611 = vmatpush.bf16.msra.mxu1 %v2492_v7 }
   0xa   :  { %v2475_v14 = vld [vmem:[#allocation2 + $0x1c0] sm:$0xf]  ;;  %v3331_v15 = vld [vmem:[#allocation2 + $0x1cc] sm:$0xf0]  ;;  %1624 = vmatpush.bf16.msra.mxu2 %v2620_v8  ;;  %v2348_v16 = vor.u32 %v3299_v13, %v2347_v11 }
   0xb   :  { %v2476_v17 = vor.u32 %v3331_v15, %v2475_v14  ;;  %v2603_v18 = vld [vmem:[#allocation2 + $0x2c0] sm:$0xf]  ;;  %v3363_v19 = vld [vmem:[#allocation2 + $0x2cc] sm:$0xf0]  ;;  %1637 = vmatpush.bf16.msra.mxu3 %v2748_v12 }
   0xc   :  { %v2731_v20 = vld [vmem:[#allocation2 + $0x3c0] sm:$0xf]  ;;  %v2604_v21 = vor.u32 %v3363_v19, %v2603_v18  ;;  %v3395_v22 = vld [vmem:[#allocation2 + $0x3cc] sm:$0xf0]  ;;  %1599 = vmatpush.bf16.msra.mxu0 %v2348_v16 }
   0xd   :  { %v2331_v23 = vld [vmem:[#allocation2 + $0xa0] sm:$0xf]  ;;  %v3295_v24 = vld [vmem:[#allocation2 + $0xac] sm:$0xf0]  ;;  %v2732_v25 = vor.u32 %v3395_v22, %v2731_v20  ;;  %1612 = vmatpush.bf16.msra.mxu1 %v2476_v17 }
   0xe   :  { %v2459_v26 = vld [vmem:[#allocation2 + $0x1a0] sm:$0xf]  ;;  %v3327_v27 = vld [vmem:[#allocation2 + $0x1ac] sm:$0xf0]  ;;  %v2332_v29 = vor.u32 %v3295_v24, %v2331_v23  ;;  %1625 = vmatpush.bf16.msra.mxu2 %v2604_v21 }
   0xf   :  { %v2587_v28 = vld [vmem:[#allocation2 + $0x2a0] sm:$0xf]  ;;  %v3359_v30 = vld [vmem:[#allocation2 + $0x2ac] sm:$0xf0]  ;;  %v2460_v33 = vor.u32 %v3327_v27, %v2459_v26  ;;  %1638 = vmatpush.bf16.msra.mxu3 %v2732_v25 }
  0x10   :  { %v2715_v31 = vld [vmem:[#allocation2 + $0x3a0] sm:$0xf]  ;;  %v3391_v32 = vld [vmem:[#allocation2 + $0x3ac] sm:$0xf0]  ;;  %v2588_v34 = vor.u32 %v3359_v30, %v2587_v28  ;;  %1600 = vmatpush.bf16.msra.mxu0 %v2332_v29 }
  0x11   :  { %v2315_v35 = vld [vmem:[#allocation2 + $0x80] sm:$0xf]  ;;  %v3291_v36 = vld [vmem:[#allocation2 + $0x8c] sm:$0xf0]  ;;  %v2716_v38 = vor.u32 %v3391_v32, %v2715_v31  ;;  %1613 = vmatpush.bf16.msra.mxu1 %v2460_v33 }
  0x12   :  { %v2443_v37 = vld [vmem:[#allocation2 + $0x180] sm:$0xf]  ;;  %v3323_v39 = vld [vmem:[#allocation2 + $0x18c] sm:$0xf0]  ;;  %v2316_v44 = vor.u32 %v3291_v36, %v2315_v35  ;;  %1626 = vmatpush.bf16.msra.mxu2 %v2588_v34 }
  0x13   :  { %v2571_v40 = vld [vmem:[#allocation2 + $0x280] sm:$0xf]  ;;  %v3355_v41 = vld [vmem:[#allocation2 + $0x28c] sm:$0xf0]  ;;  %v2444_v45 = vor.u32 %v3323_v39, %v2443_v37  ;;  %1639 = vmatpush.bf16.msra.mxu3 %v2716_v38 }
  0x14   :  { %v2699_v42 = vld [vmem:[#allocation2 + $0x380] sm:$0xf]  ;;  %v3387_v43 = vld [vmem:[#allocation2 + $0x38c] sm:$0xf0]  ;;  %v2572_v46 = vor.u32 %v3355_v41, %v2571_v40  ;;  %1601 = vmatpush.bf16.msra.mxu0 %v2316_v44 }
  0x15   :  { %v2299_v47 = vld [vmem:[#allocation2 + $0x60] sm:$0xf]  ;;  %v3287_v48 = vld [vmem:[#allocation2 + $0x6c] sm:$0xf0]  ;;  %v2700_v50 = vor.u32 %v3387_v43, %v2699_v42  ;;  %1614 = vmatpush.bf16.msra.mxu1 %v2444_v45 }
  0x16   :  { %v2427_v49 = vld [vmem:[#allocation2 + $0x160] sm:$0xf]  ;;  %v3319_v51 = vld [vmem:[#allocation2 + $0x16c] sm:$0xf0]  ;;  %v2300_v56 = vor.u32 %v3287_v48, %v2299_v47  ;;  %1627 = vmatpush.bf16.msra.mxu2 %v2572_v46 }
  0x17   :  { %v2555_v52 = vld [vmem:[#allocation2 + $0x260] sm:$0xf]  ;;  %v3351_v53 = vld [vmem:[#allocation2 + $0x26c] sm:$0xf0]  ;;  %v2428_v57 = vor.u32 %v3319_v51, %v2427_v49  ;;  %1640 = vmatpush.bf16.msra.mxu3 %v2700_v50 }
  0x18   :  { %v2683_v54 = vld [vmem:[#allocation2 + $0x360] sm:$0xf]  ;;  %v3383_v55 = vld [vmem:[#allocation2 + $0x36c] sm:$0xf0]  ;;  %v2556_v58 = vor.u32 %v3351_v53, %v2555_v52  ;;  %1602 = vmatpush.bf16.msra.mxu0 %v2300_v56 }
  0x19   :  { %v2283_v59 = vld [vmem:[#allocation2 + $0x40] sm:$0xf]  ;;  %v3283_v60 = vld [vmem:[#allocation2 + $0x4c] sm:$0xf0]  ;;  %v2684_v62 = vor.u32 %v3383_v55, %v2683_v54  ;;  %1615 = vmatpush.bf16.msra.mxu1 %v2428_v57 }
  0x1a   :  { %v2411_v61 = vld [vmem:[#allocation2 + $0x140] sm:$0xf]  ;;  %v3315_v63 = vld [vmem:[#allocation2 + $0x14c] sm:$0xf0]  ;;  %v2284_v4 = vor.u32 %v3283_v60, %v2283_v59  ;;  %1628 = vmatpush.bf16.msra.mxu2 %v2556_v58 }
  0x1b   :  { %v2539_v0 = vld [vmem:[#allocation2 + $0x240] sm:$0xf]  ;;  %v3347_v1 = vld [vmem:[#allocation2 + $0x24c] sm:$0xf0]  ;;  %v2412_v5 = vor.u32 %v3315_v63, %v2411_v61  ;;  %1641 = vmatpush.bf16.msra.mxu3 %v2684_v62 }
  0x1c   :  { %v2667_v2 = vld [vmem:[#allocation2 + $0x340] sm:$0xf]  ;;  %v3379_v3 = vld [vmem:[#allocation2 + $0x34c] sm:$0xf0]  ;;  %v2540_v6 = vor.u32 %v3347_v1, %v2539_v0  ;;  %1603 = vmatpush.bf16.msra.mxu0 %v2284_v4 }
  0x1d   :  { %v2267_v7 = vld [vmem:[#allocation2 + $0x20] sm:$0xf]  ;;  %v3279_v8 = vld [vmem:[#allocation2 + $0x2c] sm:$0xf0]  ;;  %v2668_v10 = vor.u32 %v3379_v3, %v2667_v2  ;;  %1616 = vmatpush.bf16.msra.mxu1 %v2412_v5 }
  0x1e   :  { %v2395_v9 = vld [vmem:[#allocation2 + $0x120] sm:$0xf]  ;;  %v3311_v11 = vld [vmem:[#allocation2 + $0x12c] sm:$0xf0]  ;;  %v2268_v16 = vor.u32 %v3279_v8, %v2267_v7  ;;  %1629 = vmatpush.bf16.msra.mxu2 %v2540_v6 }
  0x1f   :  { %v2523_v12 = vld [vmem:[#allocation2 + $0x220] sm:$0xf]  ;;  %v3343_v13 = vld [vmem:[#allocation2 + $0x22c] sm:$0xf0]  ;;  %v2396_v19 = vor.u32 %v3311_v11, %v2395_v9  ;;  %1642 = vmatpush.bf16.msra.mxu3 %v2668_v10  ;;  %v39_v10 = vld [vmem:[%s3968_s0 + $0x18] sm:$0xff] }
  0x20   :  { %v2651_v14 = vld [vmem:[#allocation2 + $0x320] sm:$0xf]  ;;  %v3375_v15 = vld [vmem:[#allocation2 + $0x32c] sm:$0xf0]  ;;  %v2524_v20 = vor.u32 %v3343_v13, %v2523_v12  ;;  %1604 = vmatpush.bf16.msra.mxu0 %v2268_v16 }
  0x21   :  { %v2251_v17 = vld [vmem:[#allocation2] sm:$0xf]  ;;  %v3275_v18 = vld [vmem:[#allocation2 + $0xc] sm:$0xf0]  ;;  %v2652_v24 = vor.u32 %v3375_v15, %v2651_v14  ;;  %1617 = vmatpush.bf16.msra.mxu1 %v2396_v19  ;;  %v3772_v15 = vpack.c.bf16 %v39_v10, %v39_v10  ;;  %v37_v19 = vld [vmem:[%s3968_s0 + $0x8] sm:$0xff] }
  0x22   :  { %v2379_v21 = vld [vmem:[#allocation2 + $0x100] sm:$0xf]  ;;  %v3307_v22 = vld [vmem:[#allocation2 + $0x10c] sm:$0xf0]  ;;  %v2252_v31 = vor.u32 %v3275_v18, %v2251_v17  ;;  %1630 = vmatpush.bf16.msra.mxu2 %v2524_v20  ;;  %v2493_v10 = vld [vmem:[#allocation2 + $0x1f0] sm:$0xf0] }
  0x23   :  { %v2507_v23 = vld [vmem:[#allocation2 + $0x200] sm:$0xf]  ;;  %v3339_v25 = vld [vmem:[#allocation2 + $0x20c] sm:$0xf0]  ;;  %v2380_v35 = vor.u32 %v3307_v22, %v2379_v21  ;;  %1643 = vmatpush.bf16.msra.mxu3 %v2652_v24 }
  0x24   :  { %v2635_v26 = vld [vmem:[#allocation2 + $0x300] sm:$0xf]  ;;  %v3371_v27 = vld [vmem:[#allocation2 + $0x30c] sm:$0xf0]  ;;  %v2508_v36 = vor.u32 %v3339_v25, %v2507_v23  ;;  %1605 = vmatpush.bf16.msra.mxu0 %v2252_v31  ;;  %v3780_v25 = vpack.c.bf16 %v37_v19, %v37_v19 }
  0x25   :  { %v2875_v28 = vld [vmem:[#allocation2 + $0x4e0] sm:$0xf]  ;;  %v3431_v29 = vld [vmem:[#allocation2 + $0x4ec] sm:$0xf0]  ;;  %v2636_v39 = vor.u32 %v3371_v27, %v2635_v26  ;;  %1618 = vmatpush.bf16.msra.mxu1 %v2380_v35 }
  0x26   :  { %v3003_v30 = vld [vmem:[#allocation2 + $0x5e0] sm:$0xf]  ;;  %v3463_v32 = vld [vmem:[#allocation2 + $0x5ec] sm:$0xf0]  ;;  %v2876_v40 = vor.u32 %v3431_v29, %v2875_v28  ;;  %1631 = vmatpush.bf16.msra.mxu2 %v2508_v36 }
  0x27   :  { %v3131_v33 = vld [vmem:[#allocation2 + $0x6e0] sm:$0xf]  ;;  %v3495_v34 = vld [vmem:[#allocation2 + $0x6ec] sm:$0xf0]  ;;  %v3004_v41 = vor.u32 %v3463_v32, %v3003_v30  ;;  %1644 = vmatpush.bf16.msra.mxu3 %v2636_v39 }
  0x28   :  { %v3259_v37 = vld [vmem:[#allocation2 + $0x7e0] sm:$0xf]  ;;  %v3527_v38 = vld [vmem:[#allocation2 + $0x7ec] sm:$0xf0]  ;;  %v3132_v42 = vor.u32 %v3495_v34, %v3131_v33  ;;  %1650 = vmatpush.bf16.msrb.mxu0 %v2876_v40  ;;  %1619 = vmatmul.bf16.vlgmr.msra.gmra.mxu1 %v3780_v25 }
  0x29   :  { %v2859_v43 = vld [vmem:[#allocation2 + $0x4c0] sm:$0xf]  ;;  %v3427_v44 = vld [vmem:[#allocation2 + $0x4cc] sm:$0xf0]  ;;  %v3260_v46 = vor.u32 %v3527_v38, %v3259_v37  ;;  %1663 = vmatpush.bf16.msrb.mxu1 %v3004_v41 }
  0x2a   :  { %v2987_v45 = vld [vmem:[#allocation2 + $0x5c0] sm:$0xf]  ;;  %v3459_v47 = vld [vmem:[#allocation2 + $0x5cc] sm:$0xf0]  ;;  %v2860_v52 = vor.u32 %v3427_v44, %v2859_v43  ;;  %1676 = vmatpush.bf16.msrb.mxu2 %v3132_v42  ;;  %1645 = vmatmul.bf16.vlgmr.msra.gmra.mxu3 %v3772_v15 }
  0x2b   :  { %v3115_v48 = vld [vmem:[#allocation2 + $0x6c0] sm:$0xf]  ;;  %v3491_v49 = vld [vmem:[#allocation2 + $0x6cc] sm:$0xf0]  ;;  %v2988_v54 = vor.u32 %v3459_v47, %v2987_v45  ;;  %1689 = vmatpush.bf16.msrb.mxu3 %v3260_v46 }
  0x2c   :  { %v3243_v50 = vld [vmem:[#allocation2 + $0x7c0] sm:$0xf]  ;;  %v3523_v51 = vld [vmem:[#allocation2 + $0x7cc] sm:$0xf0]  ;;  %v3116_v55 = vor.u32 %v3491_v49, %v3115_v48  ;;  %1651 = vmatpush.bf16.msrb.mxu0 %v2860_v52 }
  0x2d   :  { %v2843_v53 = vld [vmem:[#allocation2 + $0x4a0] sm:$0xf]  ;;  %v3423_v56 = vld [vmem:[#allocation2 + $0x4ac] sm:$0xf0]  ;;  %v3244_v59 = vor.u32 %v3523_v51, %v3243_v50  ;;  %1664 = vmatpush.bf16.msrb.mxu1 %v2988_v54 }
  0x2e   :  { %v2971_v57 = vld [vmem:[#allocation2 + $0x5a0] sm:$0xf]  ;;  %v3455_v58 = vld [vmem:[#allocation2 + $0x5ac] sm:$0xf0]  ;;  %v2844_v0 = vor.u32 %v3423_v56, %v2843_v53  ;;  %1677 = vmatpush.bf16.msrb.mxu2 %v3116_v55 }
  0x2f   :  { %v3099_v60 = vld [vmem:[#allocation2 + $0x6a0] sm:$0xf]  ;;  %v3487_v61 = vld [vmem:[#allocation2 + $0x6ac] sm:$0xf0]  ;;  %v2972_v1 = vor.u32 %v3455_v58, %v2971_v57  ;;  %1690 = vmatpush.bf16.msrb.mxu3 %v3244_v59 }
  0x30   :  { %v3227_v62 = vld [vmem:[#allocation2 + $0x7a0] sm:$0xf]  ;;  %v3519_v63 = vld [vmem:[#allocation2 + $0x7ac] sm:$0xf0]  ;;  %v3100_v5 = vor.u32 %v3487_v61, %v3099_v60  ;;  %1652 = vmatpush.bf16.msrb.mxu0 %v2844_v0 }
  0x31   :  { %v2827_v2 = vld [vmem:[#allocation2 + $0x480] sm:$0xf]  ;;  %v38_v3 = vld [vmem:[%s3968_s0 + $0x10] sm:$0xff]  ;;  %v3228_v11 = vor.u32 %v3519_v63, %v3227_v62  ;;  %1665 = vmatpush.bf16.msrb.mxu1 %v2972_v1 }
  0x32   :  { %v36_v4 = vld [vmem:[%s3968_s0] sm:$0xff]  ;;  %v3419_v6 = vld [vmem:[#allocation2 + $0x48c] sm:$0xf0]  ;;  %v3765_v8 = vpack.c.bf16 %v38_v3, %v38_v3  ;;  %1678 = vmatpush.bf16.msrb.mxu2 %v3100_v5  ;;  %v2365_v5 = vld [vmem:[#allocation2 + $0xf0] sm:$0xf0] }
  0x33   :  { %v2955_v7 = vld [vmem:[#allocation2 + $0x580] sm:$0xf]  ;;  %v3767_v9 = vpack.c.bf16 %v36_v4, %v36_v4  ;;  %v3451_v12 = vld [vmem:[#allocation2 + $0x58c] sm:$0xf0]  ;;  %v2828_v18 = vor.u32 %v3419_v6, %v2827_v2  ;;  %1691 = vmatpush.bf16.msrb.mxu3 %v3228_v11  ;;  %v3301_v4 = vld [vmem:[#allocation2 + $0xe4] sm:$0xf] }
  0x34   :  { %v3083_v13 = vld [vmem:[#allocation2 + $0x680] sm:$0xf]  ;;  %v3483_v14 = vld [vmem:[#allocation2 + $0x68c] sm:$0xf0]  ;;  %1632 = vmatmul.bf16.vlgmr.msra.gmra.mxu2 %v3765_v8  ;;  %v2956_v20 = vor.u32 %v3451_v12, %v2955_v7  ;;  %v3333_v6 = vld [vmem:[#allocation2 + $0x1e4] sm:$0xf] }
  0x35   :  { %v3211_v16 = vld [vmem:[#allocation2 + $0x780] sm:$0xf]  ;;  %v3515_v17 = vld [vmem:[#allocation2 + $0x78c] sm:$0xf0]  ;;  %1606 = vmatmul.bf16.vlgmr.msra.gmra.mxu0 %v3767_v9  ;;  %v3084_v21 = vor.u32 %v3483_v14, %v3083_v13  ;;  %v3365_v11 = vld [vmem:[#allocation2 + $0x2e4] sm:$0xf] }
  0x36   :  { %v2811_v22 = vld [vmem:[#allocation2 + $0x460] sm:$0xf]  ;;  %v3415_v23 = vld [vmem:[#allocation2 + $0x46c] sm:$0xf0]  ;;  %v3212_v26 = vor.u32 %v3515_v17, %v3211_v16  ;;  %1653 = vmatpush.bf16.msrb.mxu0 %v2828_v18  ;;  %1666 = vmatpush.bf16.msrb.mxu1 %v2956_v20  ;;  %v2621_v12 = vld [vmem:[#allocation2 + $0x2f0] sm:$0xf0]  ;;  %v2368_v20 = vor.u32 %v3301_v4, %v2365_v5 }
  0x37   :  { %v2939_v24 = vld [vmem:[#allocation2 + $0x560] sm:$0xf]  ;;  %v3447_v27 = vld [vmem:[#allocation2 + $0x56c] sm:$0xf0]  ;;  %v2812_v32 = vor.u32 %v3415_v23, %v2811_v22  ;;  %1679 = vmatpush.bf16.msrb.mxu2 %v3084_v21  ;;  %v3397_v16 = vld [vmem:[#allocation2 + $0x3e4] sm:$0xf] }
  0x38   :  { %v3067_v28 = vld [vmem:[#allocation2 + $0x660] sm:$0xf]  ;;  %v3479_v29 = vld [vmem:[#allocation2 + $0x66c] sm:$0xf0]  ;;  %v2940_v33 = vor.u32 %v3447_v27, %v2939_v24  ;;  %1692 = vmatpush.bf16.msrb.mxu3 %v3212_v26  ;;  %v2749_v17 = vld [vmem:[#allocation2 + $0x3f0] sm:$0xf0]  ;;  %v2496_v24 = vor.u32 %v3333_v6, %v2493_v10  ;;  %v2624_v26 = vor.u32 %v3365_v11, %v2621_v12 }
  0x39   :  { %v3195_v30 = vld [vmem:[#allocation2 + $0x760] sm:$0xf]  ;;  %v3511_v31 = vld [vmem:[#allocation2 + $0x76c] sm:$0xf0]  ;;  %v3068_v34 = vor.u32 %v3479_v29, %v3067_v28  ;;  %v3297_v21 = vld [vmem:[#allocation2 + $0xc4] sm:$0xf] }
  0x3a   :  { %v2795_v35 = vld [vmem:[#allocation2 + $0x440] sm:$0xf]  ;;  %v3411_v36 = vld [vmem:[#allocation2 + $0x44c] sm:$0xf0]  ;;  %v3196_v38 = vor.u32 %v3511_v31, %v3195_v30  ;;  %1654 = vmatpush.bf16.msrb.mxu0 %v2812_v32  ;;  %1667 = vmatpush.bf16.msrb.mxu1 %v2940_v33  ;;  %v43_v23 = vld [vmem:[%s3968_s0 + $0x38] sm:$0xff]  ;;  %v2752_v30 = vor.u32 %v3397_v16, %v2749_v17 }
  0x3b   :  { %v2923_v37 = vld [vmem:[#allocation2 + $0x540] sm:$0xf]  ;;  %v3443_v39 = vld [vmem:[#allocation2 + $0x54c] sm:$0xf0]  ;;  %v2796_v44 = vor.u32 %v3411_v36, %v2795_v35  ;;  %1680 = vmatpush.bf16.msrb.mxu2 %v3068_v34  ;;  %v2349_v27 = vld [vmem:[#allocation2 + $0xd0] sm:$0xf0] }
  0x3c   :  { %v3051_v40 = vld [vmem:[#allocation2 + $0x640] sm:$0xf]  ;;  %v3475_v41 = vld [vmem:[#allocation2 + $0x64c] sm:$0xf0]  ;;  %v2924_v45 = vor.u32 %v3443_v39, %v2923_v37  ;;  %1693 = vmatpush.bf16.msrb.mxu3 %v3196_v38  ;;  %v3329_v28 = vld [vmem:[#allocation2 + $0x1c4] sm:$0xf]  ;;  %v3799_v38 = vpack.c.bf16 %v43_v23, %v43_v23  ;;  %v2352_v39 = vor.u32 %v3297_v21, %v2349_v27 }
  0x3d   :  { %v3179_v42 = vld [vmem:[#allocation2 + $0x740] sm:$0xf]  ;;  %v3507_v43 = vld [vmem:[#allocation2 + $0x74c] sm:$0xf0]  ;;  %v3052_v46 = vor.u32 %v3475_v41, %v3051_v40  ;;  %v41_v29 = vld [vmem:[%s3968_s0 + $0x28] sm:$0xff] }
  0x3e   :  { %v2779_v47 = vld [vmem:[#allocation2 + $0x420] sm:$0xf]  ;;  %v3407_v48 = vld [vmem:[#allocation2 + $0x42c] sm:$0xf0]  ;;  %v3180_v50 = vor.u32 %v3507_v43, %v3179_v42  ;;  %1655 = vmatpush.bf16.msrb.mxu0 %v2796_v44  ;;  %1668 = vmatpush.bf16.msrb.mxu1 %v2924_v45  ;;  %v2477_v31 = vld [vmem:[#allocation2 + $0x1d0] sm:$0xf0]  ;;  %v3801_v40 = vpack.c.bf16 %v41_v29, %v41_v29 }
  0x3f   :  { %v2907_v49 = vld [vmem:[#allocation2 + $0x520] sm:$0xf]  ;;  %v3439_v51 = vld [vmem:[#allocation2 + $0x52c] sm:$0xf0]  ;;  %v2780_v56 = vor.u32 %v3407_v48, %v2779_v47  ;;  %1681 = vmatpush.bf16.msrb.mxu2 %v3052_v46  ;;  %v3361_v32 = vld [vmem:[#allocation2 + $0x2c4] sm:$0xf]  ;;  %v2480_v41 = vor.u32 %v3329_v28, %v2477_v31 }
  0x40   :  { %v3035_v52 = vld [vmem:[#allocation2 + $0x620] sm:$0xf]  ;;  %v3471_v53 = vld [vmem:[#allocation2 + $0x62c] sm:$0xf0]  ;;  %v2908_v59 = vor.u32 %v3439_v51, %v2907_v49  ;;  %1694 = vmatpush.bf16.msrb.mxu3 %v3180_v50  ;;  %v2605_v33 = vld [vmem:[#allocation2 + $0x2d0] sm:$0xf0] }
  0x41   :  { %v3163_v54 = vld [vmem:[#allocation2 + $0x720] sm:$0xf]  ;;  %v3503_v55 = vld [vmem:[#allocation2 + $0x72c] sm:$0xf0]  ;;  %v3036_v60 = vor.u32 %v3471_v53, %v3035_v52  ;;  %v3393_v35 = vld [vmem:[#allocation2 + $0x3c4] sm:$0xf]  ;;  %v2608_v42 = vor.u32 %v3361_v32, %v2605_v33 }
  0x42   :  { %v2763_v57 = vld [vmem:[#allocation2 + $0x400] sm:$0xf]  ;;  %v3403_v58 = vld [vmem:[#allocation2 + $0x40c] sm:$0xf0]  ;;  %v3164_v0 = vor.u32 %v3503_v55, %v3163_v54  ;;  %1656 = vmatpush.bf16.msrb.mxu0 %v2780_v56  ;;  %1669 = vmatpush.bf16.msrb.mxu1 %v2908_v59  ;;  %v2733_v36 = vld [vmem:[#allocation2 + $0x3d0] sm:$0xf0] }
  0x43   :  { %v2891_v61 = vld [vmem:[#allocation2 + $0x500] sm:$0xf]  ;;  %v3435_v62 = vld [vmem:[#allocation2 + $0x50c] sm:$0xf0]  ;;  %v2764_v7 = vor.u32 %v3403_v58, %v2763_v57  ;;  %1682 = vmatpush.bf16.msrb.mxu2 %v3036_v60  ;;  %v3293_v43 = vld [vmem:[#allocation2 + $0xa4] sm:$0xf]  ;;  %v2736_v46 = vor.u32 %v3393_v35, %v2733_v36 }
  0x44   :  { %v3019_v63 = vld [vmem:[#allocation2 + $0x600] sm:$0xf]  ;;  %v3467_v1 = vld [vmem:[#allocation2 + $0x60c] sm:$0xf0]  ;;  %v2892_v13 = vor.u32 %v3435_v62, %v2891_v61  ;;  %1695 = vmatpush.bf16.msrb.mxu3 %v3164_v0  ;;  %v2333_v44 = vld [vmem:[#allocation2 + $0xb0] sm:$0xf0] }
  0x45   :  { %v3147_v2 = vld [vmem:[#allocation2 + $0x700] sm:$0xf]  ;;  %v3499_v3 = vld [vmem:[#allocation2 + $0x70c] sm:$0xf0]  ;;  %v3020_v14 = vor.u32 %v3467_v1, %v3019_v63  ;;  %v3325_v45 = vld [vmem:[#allocation2 + $0x1a4] sm:$0xf]  ;;  %v2336_v52 = vor.u32 %v3293_v43, %v2333_v44 }
  0x46   :  { %v42_v18 = vld [vmem:[%s3968_s0 + $0x30] sm:$0xff]  ;;  %v3148_v19 = vor.u32 %v3499_v3, %v3147_v2  ;;  %v40_v22 = vld [vmem:[%s3968_s0 + $0x20] sm:$0xff]  ;;  %1657 = vmatpush.bf16.msrb.mxu0 %v2764_v7  ;;  %1670 = vmatpush.bf16.msrb.mxu1 %v2892_v13 }
  0x47   :  { %v3795_v34 = vpack.c.bf16 %v42_v18, %v42_v18  ;;  %1683 = vmatpush.bf16.msrb.mxu2 %v3020_v14  ;;  %v3797_v37 = vpack.c.bf16 %v40_v22, %v40_v22  ;;  %v2461_v47 = vld [vmem:[#allocation2 + $0x1b0] sm:$0xf0]  ;;  %v3357_v48 = vld [vmem:[#allocation2 + $0x2a4] sm:$0xf] }
  0x48   :  { %1696 = vmatpush.bf16.msrb.mxu3 %v3148_v19  ;;  %v2589_v49 = vld [vmem:[#allocation2 + $0x2b0] sm:$0xf0]  ;;  %v3389_v50 = vld [vmem:[#allocation2 + $0x3a4] sm:$0xf]  ;;  %v2464_v53 = vor.u32 %v3325_v45, %v2461_v47 }
  0x49   :  { %v2717_v51 = vld [vmem:[#allocation2 + $0x3b0] sm:$0xf0]  ;;  %1658 = vmatmul.bf16.vlgmr.msrb.gmra.mxu0 %v3797_v37  ;;  %1671 = vmatmul.bf16.vlgmr.msrb.gmra.mxu1 %v3801_v40  ;;  %v2592_v54 = vor.u32 %v3357_v48, %v2589_v49  ;;  %v3289_v55 = vld [vmem:[#allocation2 + $0x84] sm:$0xf] }
  0x4a   :  { %1702 = vmatpush.bf16.msra.mxu0 %v2368_v20  ;;  %1715 = vmatpush.bf16.msra.mxu1 %v2496_v24  ;;  %v2317_v56 = vld [vmem:[#allocation2 + $0x90] sm:$0xf0]  ;;  %v3321_v57 = vld [vmem:[#allocation2 + $0x184] sm:$0xf]  ;;  %v2720_v58 = vor.u32 %v3389_v50, %v2717_v51 }
  0x4b   :  { %1728 = vmatpush.bf16.msra.mxu2 %v2624_v26  ;;  %1697 = vmatmul.bf16.vlgmr.msrb.gmra.mxu3 %v3799_v38  ;;  %v2445_v59 = vld [vmem:[#allocation2 + $0x190] sm:$0xf0]  ;;  %v3353_v60 = vld [vmem:[#allocation2 + $0x284] sm:$0xf]  ;;  %v2320_v0 = vor.u32 %v3289_v55, %v2317_v56 }
  0x4c   :  { %1741 = vmatpush.bf16.msra.mxu3 %v2752_v30  ;;  %1684 = vmatmul.bf16.vlgmr.msrb.gmra.mxu2 %v3795_v34  ;;  %v2573_v61 = vld [vmem:[#allocation2 + $0x290] sm:$0xf0]  ;;  %v3385_v62 = vld [vmem:[#allocation2 + $0x384] sm:$0xf]  ;;  %v2448_v1 = vor.u32 %v3321_v57, %v2445_v59 }
  0x4d   :  { %v2701_v63 = vld [vmem:[#allocation2 + $0x390] sm:$0xf0]  ;;  %v2576_v2 = vor.u32 %v3353_v60, %v2573_v61  ;;  %v3285_v3 = vld [vmem:[#allocation2 + $0x64] sm:$0xf] }
  0x4e   :  { %1703 = vmatpush.bf16.msra.mxu0 %v2352_v39  ;;  %1716 = vmatpush.bf16.msra.mxu1 %v2480_v41  ;;  %v2301_v4 = vld [vmem:[#allocation2 + $0x70] sm:$0xf0]  ;;  %v3317_v5 = vld [vmem:[#allocation2 + $0x164] sm:$0xf]  ;;  %v2704_v6 = vor.u32 %v3385_v62, %v2701_v63 }
  0x4f   :  { %1729 = vmatpush.bf16.msra.mxu2 %v2608_v42  ;;  %v2429_v7 = vld [vmem:[#allocation2 + $0x170] sm:$0xf0]  ;;  %v3349_v10 = vld [vmem:[#allocation2 + $0x264] sm:$0xf]  ;;  %v2304_v14 = vor.u32 %v3285_v3, %v2301_v4 }
  0x50   :  { %1742 = vmatpush.bf16.msra.mxu3 %v2736_v46  ;;  %v2557_v11 = vld [vmem:[#allocation2 + $0x270] sm:$0xf0]  ;;  %v3381_v12 = vld [vmem:[#allocation2 + $0x364] sm:$0xf]  ;;  %v2432_v16 = vor.u32 %v3317_v5, %v2429_v7 }
  0x51   :  { %v2685_v13 = vld [vmem:[#allocation2 + $0x370] sm:$0xf0]  ;;  %v2560_v17 = vor.u32 %v3349_v10, %v2557_v11  ;;  %v3281_v18 = vld [vmem:[#allocation2 + $0x44] sm:$0xf] }
  0x52   :  { %1704 = vmatpush.bf16.msra.mxu0 %v2336_v52  ;;  %1717 = vmatpush.bf16.msra.mxu1 %v2464_v53  ;;  %v2285_v19 = vld [vmem:[#allocation2 + $0x50] sm:$0xf0]  ;;  %v3313_v20 = vld [vmem:[#allocation2 + $0x144] sm:$0xf]  ;;  %v2688_v21 = vor.u32 %v3381_v12, %v2685_v13 }
  0x53   :  { %1730 = vmatpush.bf16.msra.mxu2 %v2592_v54  ;;  %v2413_v22 = vld [vmem:[#allocation2 + $0x150] sm:$0xf0]  ;;  %v3345_v23 = vld [vmem:[#allocation2 + $0x244] sm:$0xf]  ;;  %v2288_v28 = vor.u32 %v3281_v18, %v2285_v19 }
  0x54   :  { %1743 = vmatpush.bf16.msra.mxu3 %v2720_v58  ;;  %v2541_v24 = vld [vmem:[#allocation2 + $0x250] sm:$0xf0]  ;;  %v3377_v26 = vld [vmem:[#allocation2 + $0x344] sm:$0xf]  ;;  %v2416_v29 = vor.u32 %v3313_v20, %v2413_v22 }
  0x55   :  { %v2669_v27 = vld [vmem:[#allocation2 + $0x350] sm:$0xf0]  ;;  %v2544_v30 = vor.u32 %v3345_v23, %v2541_v24  ;;  %v3277_v31 = vld [vmem:[#allocation2 + $0x24] sm:$0xf] }
  0x56   :  { %1705 = vmatpush.bf16.msra.mxu0 %v2320_v0  ;;  %1718 = vmatpush.bf16.msra.mxu1 %v2448_v1  ;;  %v2269_v32 = vld [vmem:[#allocation2 + $0x30] sm:$0xf0]  ;;  %v3309_v33 = vld [vmem:[#allocation2 + $0x124] sm:$0xf]  ;;  %v2672_v35 = vor.u32 %v3377_v26, %v2669_v27 }
  0x57   :  { %1731 = vmatpush.bf16.msra.mxu2 %v2576_v2  ;;  %v2397_v36 = vld [vmem:[#allocation2 + $0x130] sm:$0xf0]  ;;  %v3341_v39 = vld [vmem:[#allocation2 + $0x224] sm:$0xf]  ;;  %v2272_v44 = vor.u32 %v3277_v31, %v2269_v32 }
  0x58   :  { %1744 = vmatpush.bf16.msra.mxu3 %v2704_v6  ;;  %v2525_v41 = vld [vmem:[#allocation2 + $0x230] sm:$0xf0]  ;;  %v3373_v42 = vld [vmem:[#allocation2 + $0x324] sm:$0xf]  ;;  %v2400_v47 = vor.u32 %v3309_v33, %v2397_v36 }
  0x59   :  { %v2653_v43 = vld [vmem:[#allocation2 + $0x330] sm:$0xf0]  ;;  %v3273_v45 = vld [vmem:[#allocation2 + $0x4] sm:$0xf]  ;;  %v2528_v48 = vor.u32 %v3341_v39, %v2525_v41 }
  0x5a   :  { %1706 = vmatpush.bf16.msra.mxu0 %v2304_v14  ;;  %1719 = vmatpush.bf16.msra.mxu1 %v2432_v16  ;;  %v2253_v46 = vld [vmem:[#allocation2 + $0x10] sm:$0xf0]  ;;  %v3305_v49 = vld [vmem:[#allocation2 + $0x104] sm:$0xf]  ;;  %v2656_v52 = vor.u32 %v3373_v42, %v2653_v43 }
  0x5b   :  { %1732 = vmatpush.bf16.msra.mxu2 %v2560_v17  ;;  %v2381_v50 = vld [vmem:[#allocation2 + $0x110] sm:$0xf0]  ;;  %v3337_v51 = vld [vmem:[#allocation2 + $0x204] sm:$0xf]  ;;  %v2256_v59 = vor.u32 %v3273_v45, %v2253_v46 }
  0x5c   :  { %1745 = vmatpush.bf16.msra.mxu3 %v2688_v21  ;;  %v2509_v53 = vld [vmem:[#allocation2 + $0x210] sm:$0xf0]  ;;  %v3369_v54 = vld [vmem:[#allocation2 + $0x304] sm:$0xf]  ;;  %v2384_v63 = vor.u32 %v3305_v49, %v2381_v50 }
  0x5d   :  { %v2637_v55 = vld [vmem:[#allocation2 + $0x310] sm:$0xf0]  ;;  %v3429_v56 = vld [vmem:[#allocation2 + $0x4e4] sm:$0xf]  ;;  %v2512_v0 = vor.u32 %v3337_v51, %v2509_v53 }
  0x5e   :  { %1707 = vmatpush.bf16.msra.mxu0 %v2288_v28  ;;  %1720 = vmatpush.bf16.msra.mxu1 %v2416_v29  ;;  %v2877_v57 = vld [vmem:[#allocation2 + $0x4f0] sm:$0xf0]  ;;  %v3461_v58 = vld [vmem:[#allocation2 + $0x5e4] sm:$0xf]  ;;  %v2640_v3 = vor.u32 %v3369_v54, %v2637_v55 }
  0x5f   :  { %1733 = vmatpush.bf16.msra.mxu2 %v2544_v30  ;;  %v3005_v60 = vld [vmem:[#allocation2 + $0x5f0] sm:$0xf0]  ;;  %v3493_v61 = vld [vmem:[#allocation2 + $0x6e4] sm:$0xf]  ;;  %v2880_v4 = vor.u32 %v3429_v56, %v2877_v57 }
  0x60   :  { %1746 = vmatpush.bf16.msra.mxu3 %v2672_v35  ;;  %v3133_v62 = vld [vmem:[#allocation2 + $0x6f0] sm:$0xf0]  ;;  %v3525_v1 = vld [vmem:[#allocation2 + $0x7e4] sm:$0xf]  ;;  %v3008_v5 = vor.u32 %v3461_v58, %v3005_v60 }
  0x61   :  { %v3261_v2 = vld [vmem:[#allocation2 + $0x7f0] sm:$0xf0]  ;;  %v3136_v6 = vor.u32 %v3493_v61, %v3133_v62  ;;  %v3425_v7 = vld [vmem:[#allocation2 + $0x4c4] sm:$0xf] }
  0x62   :  { %1708 = vmatpush.bf16.msra.mxu0 %v2272_v44  ;;  %1721 = vmatpush.bf16.msra.mxu1 %v2400_v47  ;;  %v2861_v10 = vld [vmem:[#allocation2 + $0x4d0] sm:$0xf0]  ;;  %v3457_v11 = vld [vmem:[#allocation2 + $0x5c4] sm:$0xf]  ;;  %v3264_v12 = vor.u32 %v3525_v1, %v3261_v2 }
  0x63   :  { %1734 = vmatpush.bf16.msra.mxu2 %v2528_v48  ;;  %v2989_v13 = vld [vmem:[#allocation2 + $0x5d0] sm:$0xf0]  ;;  %v3489_v14 = vld [vmem:[#allocation2 + $0x6c4] sm:$0xf]  ;;  %v2864_v19 = vor.u32 %v3425_v7, %v2861_v10 }
  0x64   :  { %1747 = vmatpush.bf16.msra.mxu3 %v2656_v52  ;;  %v3117_v16 = vld [vmem:[#allocation2 + $0x6d0] sm:$0xf0]  ;;  %v3521_v17 = vld [vmem:[#allocation2 + $0x7c4] sm:$0xf]  ;;  %v2992_v20 = vor.u32 %v3457_v11, %v2989_v13 }
  0x65   :  { %v3245_v18 = vld [vmem:[#allocation2 + $0x7d0] sm:$0xf0]  ;;  %v3120_v21 = vor.u32 %v3489_v14, %v3117_v16  ;;  %v3421_v22 = vld [vmem:[#allocation2 + $0x4a4] sm:$0xf] }
  0x66   :  { %1709 = vmatpush.bf16.msra.mxu0 %v2256_v59  ;;  %1722 = vmatpush.bf16.msra.mxu1 %v2384_v63  ;;  %v2845_v23 = vld [vmem:[#allocation2 + $0x4b0] sm:$0xf0]  ;;  %v3453_v24 = vld [vmem:[#allocation2 + $0x5a4] sm:$0xf]  ;;  %v3248_v26 = vor.u32 %v3521_v17, %v3245_v18 }
  0x67   :  { %1735 = vmatpush.bf16.msra.mxu2 %v2512_v0  ;;  %v2973_v27 = vld [vmem:[#allocation2 + $0x5b0] sm:$0xf0]  ;;  %v3485_v28 = vld [vmem:[#allocation2 + $0x6a4] sm:$0xf]  ;;  %v2848_v32 = vor.u32 %v3421_v22, %v2845_v23 }
  0x68   :  { %1748 = vmatpush.bf16.msra.mxu3 %v2640_v3  ;;  %v3101_v29 = vld [vmem:[#allocation2 + $0x6b0] sm:$0xf0]  ;;  %v3517_v30 = vld [vmem:[#allocation2 + $0x7a4] sm:$0xf]  ;;  %v2976_v33 = vor.u32 %v3453_v24, %v2973_v27 }
  0x69   :  { %v3229_v31 = vld [vmem:[#allocation2 + $0x7b0] sm:$0xf0]  ;;  %1710 = vmatmul.bf16.vlgmr.msra.gmra.mxu0 %v3767_v9  ;;  %1723 = vmatmul.bf16.vlgmr.msra.gmra.mxu1 %v3780_v25  ;;  %v3104_v35 = vor.u32 %v3485_v28, %v3101_v29  ;;  %v3417_v36 = vld [vmem:[#allocation2 + $0x484] sm:$0xf] }
  0x6a   :  { %1754 = vmatpush.bf16.msrb.mxu0 %v2880_v4  ;;  %1767 = vmatpush.bf16.msrb.mxu1 %v3008_v5  ;;  %v2829_v39 = vld [vmem:[#allocation2 + $0x490] sm:$0xf0]  ;;  %v3449_v41 = vld [vmem:[#allocation2 + $0x584] sm:$0xf]  ;;  %v3232_v42 = vor.u32 %v3517_v30, %v3229_v31 }
  0x6b   :  { %1780 = vmatpush.bf16.msrb.mxu2 %v3136_v6  ;;  %1749 = vmatmul.bf16.vlgmr.msra.gmra.mxu3 %v3772_v15  ;;  %v2957_v43 = vld [vmem:[#allocation2 + $0x590] sm:$0xf0]  ;;  %v3481_v44 = vld [vmem:[#allocation2 + $0x684] sm:$0xf]  ;;  %v2832_v48 = vor.u32 %v3417_v36, %v2829_v39  ;;  %v2371_v39 = vld [vmem:[#allocation2 + $0xe8] sm:$0xf] }
  0x6c   :  { %1793 = vmatpush.bf16.msrb.mxu3 %v3264_v12  ;;  %1736 = vmatmul.bf16.vlgmr.msra.gmra.mxu2 %v3765_v8  ;;  %v3085_v45 = vld [vmem:[#allocation2 + $0x690] sm:$0xf0]  ;;  %v3513_v46 = vld [vmem:[#allocation2 + $0x784] sm:$0xf]  ;;  %v2960_v49 = vor.u32 %v3449_v41, %v2957_v43  ;;  %v3304_v41 = vld [vmem:[#allocation2 + $0xf4] sm:$0xf0] }
  0x6d   :  { %v3213_v47 = vld [vmem:[#allocation2 + $0x790] sm:$0xf0]  ;;  %v3088_v50 = vor.u32 %v3481_v44, %v3085_v45  ;;  %v3413_v51 = vld [vmem:[#allocation2 + $0x464] sm:$0xf]  ;;  %v3336_v44 = vld [vmem:[#allocation2 + $0x1f4] sm:$0xf0] }
  0x6e   :  { %1755 = vmatpush.bf16.msrb.mxu0 %v2864_v19  ;;  %1768 = vmatpush.bf16.msrb.mxu1 %v2992_v20  ;;  %v2813_v52 = vld [vmem:[#allocation2 + $0x470] sm:$0xf0]  ;;  %v3445_v53 = vld [vmem:[#allocation2 + $0x564] sm:$0xf]  ;;  %v3216_v54 = vor.u32 %v3513_v46, %v3213_v47  ;;  %v2627_v45 = vld [vmem:[#allocation2 + $0x2e8] sm:$0xf] }
  0x6f   :  { %1781 = vmatpush.bf16.msrb.mxu2 %v3120_v21  ;;  %v2941_v55 = vld [vmem:[#allocation2 + $0x570] sm:$0xf0]  ;;  %v3477_v56 = vld [vmem:[#allocation2 + $0x664] sm:$0xf]  ;;  %v2816_v60 = vor.u32 %v3413_v51, %v2813_v52  ;;  %v3368_v46 = vld [vmem:[#allocation2 + $0x2f4] sm:$0xf0]  ;;  %v2372_v52 = vor.u32 %v3304_v41, %v2371_v39 }
  0x70   :  { %1794 = vmatpush.bf16.msrb.mxu3 %v3248_v26  ;;  %v3069_v57 = vld [vmem:[#allocation2 + $0x670] sm:$0xf0]  ;;  %v3509_v58 = vld [vmem:[#allocation2 + $0x764] sm:$0xf]  ;;  %v2944_v61 = vor.u32 %v3445_v53, %v2941_v55  ;;  %v2355_v55 = vld [vmem:[#allocation2 + $0xc8] sm:$0xf] }
  0x71   :  { %v3197_v59 = vld [vmem:[#allocation2 + $0x770] sm:$0xf0]  ;;  %v3072_v62 = vor.u32 %v3477_v56, %v3069_v57  ;;  %v3409_v63 = vld [vmem:[#allocation2 + $0x444] sm:$0xf]  ;;  %v3300_v56 = vld [vmem:[#allocation2 + $0xd4] sm:$0xf0] }
  0x72   :  { %1756 = vmatpush.bf16.msrb.mxu0 %v2848_v32  ;;  %1769 = vmatpush.bf16.msrb.mxu1 %v2976_v33  ;;  %v2797_v0 = vld [vmem:[#allocation2 + $0x450] sm:$0xf0]  ;;  %v3441_v1 = vld [vmem:[#allocation2 + $0x544] sm:$0xf]  ;;  %v3200_v2 = vor.u32 %v3509_v58, %v3197_v59  ;;  %v2483_v57 = vld [vmem:[#allocation2 + $0x1c8] sm:$0xf] }
  0x73   :  { %1782 = vmatpush.bf16.msrb.mxu2 %v3104_v35  ;;  %v2925_v3 = vld [vmem:[#allocation2 + $0x550] sm:$0xf0]  ;;  %v3473_v4 = vld [vmem:[#allocation2 + $0x644] sm:$0xf]  ;;  %v2800_v10 = vor.u32 %v3409_v63, %v2797_v0  ;;  %v3332_v59 = vld [vmem:[#allocation2 + $0x1d4] sm:$0xf0]  ;;  %v2356_v0 = vor.u32 %v3300_v56, %v2355_v55 }
  0x74   :  { %1795 = vmatpush.bf16.msrb.mxu3 %v3232_v42  ;;  %v3053_v5 = vld [vmem:[#allocation2 + $0x650] sm:$0xf0]  ;;  %v3505_v6 = vld [vmem:[#allocation2 + $0x744] sm:$0xf]  ;;  %v2928_v11 = vor.u32 %v3441_v1, %v2925_v3  ;;  %v2499_v42 = vld [vmem:[#allocation2 + $0x1e8] sm:$0xf]  ;;  %v2484_v1 = vor.u32 %v3332_v59, %v2483_v57 }
  0x75   :  { %v3181_v7 = vld [vmem:[#allocation2 + $0x750] sm:$0xf0]  ;;  %v3056_v12 = vor.u32 %v3473_v4, %v3053_v5  ;;  %v3405_v13 = vld [vmem:[#allocation2 + $0x424] sm:$0xf]  ;;  %v2500_v53 = vor.u32 %v3336_v44, %v2499_v42  ;;  %v3396_v63 = vld [vmem:[#allocation2 + $0x3d4] sm:$0xf0] }
  0x76   :  { %1757 = vmatpush.bf16.msrb.mxu0 %v2832_v48  ;;  %1770 = vmatpush.bf16.msrb.mxu1 %v2960_v49  ;;  %v2781_v14 = vld [vmem:[#allocation2 + $0x430] sm:$0xf0]  ;;  %v3437_v16 = vld [vmem:[#allocation2 + $0x524] sm:$0xf]  ;;  %v3184_v17 = vor.u32 %v3505_v6, %v3181_v7  ;;  %v2755_v49 = vld [vmem:[#allocation2 + $0x3e8] sm:$0xf] }
  0x77   :  { %1783 = vmatpush.bf16.msrb.mxu2 %v3088_v50  ;;  %v2909_v18 = vld [vmem:[#allocation2 + $0x530] sm:$0xf0]  ;;  %v3469_v19 = vld [vmem:[#allocation2 + $0x624] sm:$0xf]  ;;  %v2784_v23 = vor.u32 %v3405_v13, %v2781_v14  ;;  %v3400_v50 = vld [vmem:[#allocation2 + $0x3f4] sm:$0xf0] }
  0x78   :  { %1796 = vmatpush.bf16.msrb.mxu3 %v3216_v54  ;;  %v3037_v20 = vld [vmem:[#allocation2 + $0x630] sm:$0xf0]  ;;  %v3501_v21 = vld [vmem:[#allocation2 + $0x724] sm:$0xf]  ;;  %v2912_v27 = vor.u32 %v3437_v16, %v2909_v18  ;;  %v2628_v54 = vor.u32 %v3368_v46, %v2627_v45  ;;  %v2756_v58 = vor.u32 %v3400_v50, %v2755_v49  ;;  %v2339_v3 = vld [vmem:[#allocation2 + $0xa8] sm:$0xf] }
  0x79   :  { %v3165_v22 = vld [vmem:[#allocation2 + $0x730] sm:$0xf0]  ;;  %v3401_v24 = vld [vmem:[#allocation2 + $0x404] sm:$0xf]  ;;  %v3040_v28 = vor.u32 %v3469_v19, %v3037_v20  ;;  %v3296_v4 = vld [vmem:[#allocation2 + $0xb4] sm:$0xf0] }
  0x7a   :  { %1758 = vmatpush.bf16.msrb.mxu0 %v2816_v60  ;;  %1771 = vmatpush.bf16.msrb.mxu1 %v2944_v61  ;;  %v2765_v26 = vld [vmem:[#allocation2 + $0x410] sm:$0xf0]  ;;  %v3433_v29 = vld [vmem:[#allocation2 + $0x504] sm:$0xf]  ;;  %v3168_v32 = vor.u32 %v3501_v21, %v3165_v22  ;;  %v2611_v60 = vld [vmem:[#allocation2 + $0x2c8] sm:$0xf]  ;;  %v2340_v14 = vor.u32 %v3296_v4, %v2339_v3 }
  0x7b   :  { %1784 = vmatpush.bf16.msrb.mxu2 %v3072_v62  ;;  %v2893_v30 = vld [vmem:[#allocation2 + $0x510] sm:$0xf0]  ;;  %v3465_v31 = vld [vmem:[#allocation2 + $0x604] sm:$0xf]  ;;  %v2768_v43 = vor.u32 %v3401_v24, %v2765_v26  ;;  %v3364_v61 = vld [vmem:[#allocation2 + $0x2d4] sm:$0xf0] }
  0x7c   :  { %1797 = vmatpush.bf16.msrb.mxu3 %v3200_v2  ;;  %v3021_v33 = vld [vmem:[#allocation2 + $0x610] sm:$0xf0]  ;;  %v3497_v35 = vld [vmem:[#allocation2 + $0x704] sm:$0xf]  ;;  %v2896_v47 = vor.u32 %v3433_v29, %v2893_v30  ;;  %v2739_v62 = vld [vmem:[#allocation2 + $0x3c8] sm:$0xf]  ;;  %v2612_v2 = vor.u32 %v3364_v61, %v2611_v60 }
  0x7d   :  { %v3149_v36 = vld [vmem:[#allocation2 + $0x710] sm:$0xf0]  ;;  %v3024_v48 = vor.u32 %v3465_v31, %v3021_v33  ;;  %v2467_v5 = vld [vmem:[#allocation2 + $0x1a8] sm:$0xf]  ;;  %v2740_v6 = vor.u32 %v3396_v63, %v2739_v62  ;;  %v3328_v7 = vld [vmem:[#allocation2 + $0x1b4] sm:$0xf0] }
  0x7e   :  { %1759 = vmatpush.bf16.msrb.mxu0 %v2800_v10  ;;  %1772 = vmatpush.bf16.msrb.mxu1 %v2928_v11  ;;  %v3152_v51 = vor.u32 %v3497_v35, %v3149_v36  ;;  %v2595_v10 = vld [vmem:[#allocation2 + $0x2a8] sm:$0xf]  ;;  %v3360_v11 = vld [vmem:[#allocation2 + $0x2b4] sm:$0xf0]  ;;  %v2468_v16 = vor.u32 %v3328_v7, %v2467_v5 }
  0x7f   :  { %1785 = vmatpush.bf16.msrb.mxu2 %v3056_v12  ;;  %v2723_v12 = vld [vmem:[#allocation2 + $0x3a8] sm:$0xf]  ;;  %v3392_v13 = vld [vmem:[#allocation2 + $0x3b4] sm:$0xf0] }
  0x80   :  { %1798 = vmatpush.bf16.msrb.mxu3 %v3184_v17  ;;  %v2596_v17 = vor.u32 %v3360_v11, %v2595_v10  ;;  %v2323_v18 = vld [vmem:[#allocation2 + $0x88] sm:$0xf]  ;;  %v3292_v19 = vld [vmem:[#allocation2 + $0x94] sm:$0xf0]  ;;  %v2724_v21 = vor.u32 %v3392_v13, %v2723_v12 }
  0x81   :  { %v2451_v20 = vld [vmem:[#allocation2 + $0x188] sm:$0xf]  ;;  %v3324_v22 = vld [vmem:[#allocation2 + $0x194] sm:$0xf0] }
  0x82   :  { %1760 = vmatpush.bf16.msrb.mxu0 %v2784_v23  ;;  %1773 = vmatpush.bf16.msrb.mxu1 %v2912_v27  ;;  %v2579_v23 = vld [vmem:[#allocation2 + $0x288] sm:$0xf]  ;;  %v3356_v24 = vld [vmem:[#allocation2 + $0x294] sm:$0xf0]  ;;  %v2452_v29 = vor.u32 %v3324_v22, %v2451_v20 }
  0x83   :  { %1786 = vmatpush.bf16.msrb.mxu2 %v3040_v28  ;;  %v2707_v26 = vld [vmem:[#allocation2 + $0x388] sm:$0xf]  ;;  %v3388_v27 = vld [vmem:[#allocation2 + $0x394] sm:$0xf0]  ;;  %v2324_v28 = vor.u32 %v3292_v19, %v2323_v18  ;;  %v2580_v30 = vor.u32 %v3356_v24, %v2579_v23 }
  0x84   :  { %1799 = vmatpush.bf16.msrb.mxu3 %v3168_v32  ;;  %v2307_v31 = vld [vmem:[#allocation2 + $0x68] sm:$0xf]  ;;  %v3288_v32 = vld [vmem:[#allocation2 + $0x74] sm:$0xf0]  ;;  %v2708_v35 = vor.u32 %v3388_v27, %v2707_v26 }
  0x85   :  { %v2435_v33 = vld [vmem:[#allocation2 + $0x168] sm:$0xf]  ;;  %v3320_v36 = vld [vmem:[#allocation2 + $0x174] sm:$0xf0]  ;;  %v2308_v44 = vor.u32 %v3288_v32, %v2307_v31 }
  0x86   :  { %1761 = vmatpush.bf16.msrb.mxu0 %v2768_v43  ;;  %1774 = vmatpush.bf16.msrb.mxu1 %v2896_v47  ;;  %v2563_v39 = vld [vmem:[#allocation2 + $0x268] sm:$0xf]  ;;  %v3352_v41 = vld [vmem:[#allocation2 + $0x274] sm:$0xf0]  ;;  %v2436_v45 = vor.u32 %v3320_v36, %v2435_v33 }
  0x87   :  { %1787 = vmatpush.bf16.msrb.mxu2 %v3024_v48  ;;  %v2691_v42 = vld [vmem:[#allocation2 + $0x368] sm:$0xf]  ;;  %v3384_v43 = vld [vmem:[#allocation2 + $0x374] sm:$0xf0]  ;;  %v2564_v46 = vor.u32 %v3352_v41, %v2563_v39 }
  0x88   :  { %1800 = vmatpush.bf16.msrb.mxu3 %v3152_v51  ;;  %v2291_v47 = vld [vmem:[#allocation2 + $0x48] sm:$0xf]  ;;  %v3284_v48 = vld [vmem:[#allocation2 + $0x54] sm:$0xf0]  ;;  %v2692_v50 = vor.u32 %v3384_v43, %v2691_v42 }
  0x89   :  { %1762 = vmatmul.bf16.vlgmr.msrb.gmra.mxu0 %v3797_v37  ;;  %1775 = vmatmul.bf16.vlgmr.msrb.gmra.mxu1 %v3801_v40  ;;  %v2419_v49 = vld [vmem:[#allocation2 + $0x148] sm:$0xf]  ;;  %v3316_v51 = vld [vmem:[#allocation2 + $0x154] sm:$0xf0]  ;;  %v2292_v56 = vor.u32 %v3284_v48, %v2291_v47 }
  0x8a   :  { %1806 = vmatpush.bf16.msra.mxu0 %v2372_v52  ;;  %1819 = vmatpush.bf16.msra.mxu1 %v2500_v53  ;;  %v2547_v52 = vld [vmem:[#allocation2 + $0x248] sm:$0xf]  ;;  %v3348_v53 = vld [vmem:[#allocation2 + $0x254] sm:$0xf0]  ;;  %v2420_v57 = vor.u32 %v3316_v51, %v2419_v49 }
  0x8b   :  { %1832 = vmatpush.bf16.msra.mxu2 %v2628_v54  ;;  %1801 = vmatmul.bf16.vlgmr.msrb.gmra.mxu3 %v3799_v38  ;;  %v2675_v54 = vld [vmem:[#allocation2 + $0x348] sm:$0xf]  ;;  %v3380_v55 = vld [vmem:[#allocation2 + $0x354] sm:$0xf0] }
  0x8c   :  { %1845 = vmatpush.bf16.msra.mxu3 %v2756_v58  ;;  %1788 = vmatmul.bf16.vlgmr.msrb.gmra.mxu2 %v3795_v34  ;;  %v2548_v58 = vor.u32 %v3348_v53, %v2547_v52  ;;  %v2275_v59 = vld [vmem:[#allocation2 + $0x28] sm:$0xf]  ;;  %v3280_v60 = vld [vmem:[#allocation2 + $0x34] sm:$0xf0]  ;;  %v2676_v62 = vor.u32 %v3380_v55, %v2675_v54 }
  0x8d   :  { %v2403_v61 = vld [vmem:[#allocation2 + $0x128] sm:$0xf]  ;;  %v3312_v63 = vld [vmem:[#allocation2 + $0x134] sm:$0xf0]  ;;  %v2276_v4 = vor.u32 %v3280_v60, %v2275_v59 }
  0x8e   :  { %1807 = vmatpush.bf16.msra.mxu0 %v2356_v0  ;;  %1820 = vmatpush.bf16.msra.mxu1 %v2484_v1  ;;  %v2531_v0 = vld [vmem:[#allocation2 + $0x228] sm:$0xf]  ;;  %v3344_v1 = vld [vmem:[#allocation2 + $0x234] sm:$0xf0]  ;;  %v2404_v7 = vor.u32 %v3312_v63, %v2403_v61 }
  0x8f   :  { %1833 = vmatpush.bf16.msra.mxu2 %v2612_v2  ;;  %v2659_v2 = vld [vmem:[#allocation2 + $0x328] sm:$0xf]  ;;  %v3376_v3 = vld [vmem:[#allocation2 + $0x334] sm:$0xf0]  ;;  %v2532_v10 = vor.u32 %v3344_v1, %v2531_v0 }
  0x90   :  { %1846 = vmatpush.bf16.msra.mxu3 %v2740_v6  ;;  %v2259_v5 = vld [vmem:[#allocation2 + $0x8] sm:$0xf]  ;;  %v3276_v6 = vld [vmem:[#allocation2 + $0x14] sm:$0xf0] }
  0x91   :  { %v2387_v11 = vld [vmem:[#allocation2 + $0x108] sm:$0xf]  ;;  %v3308_v12 = vld [vmem:[#allocation2 + $0x114] sm:$0xf0]  ;;  %v2260_v22 = vor.u32 %v3276_v6, %v2259_v5  ;;  %v3822_v6 = vld [vmem:[%s3970_s2] sm:$0xf] }
  0x92   :  { %1808 = vmatpush.bf16.msra.mxu0 %v2340_v14  ;;  %1821 = vmatpush.bf16.msra.mxu1 %v2468_v16  ;;  %v2515_v13 = vld [vmem:[#allocation2 + $0x208] sm:$0xf]  ;;  %v2660_v14 = vor.u32 %v3376_v3, %v2659_v2  ;;  %v3340_v16 = vld [vmem:[#allocation2 + $0x214] sm:$0xf0]  ;;  %v2388_v27 = vor.u32 %v3308_v12, %v2387_v11 }
  0x93   :  { %1834 = vmatpush.bf16.msra.mxu2 %v2596_v17  ;;  %v2643_v17 = vld [vmem:[#allocation2 + $0x308] sm:$0xf]  ;;  %v3372_v18 = vld [vmem:[#allocation2 + $0x314] sm:$0xf0] }
  0x94   :  { %1847 = vmatpush.bf16.msra.mxu3 %v2724_v21  ;;  %v2883_v19 = vld [vmem:[#allocation2 + $0x4e8] sm:$0xf]  ;;  %v3432_v20 = vld [vmem:[#allocation2 + $0x4f4] sm:$0xf0]  ;;  %v2644_v31 = vor.u32 %v3372_v18, %v2643_v17  ;;  %v310_v18 = vperm.slane %v3822_v6, 0 }
  0x95   :  { %v3011_v21 = vld [vmem:[#allocation2 + $0x5e8] sm:$0xf]  ;;  %v3464_v23 = vld [vmem:[#allocation2 + $0x5f4] sm:$0xf0]  ;;  %v2884_v32 = vor.u32 %v3432_v20, %v2883_v19 }
  0x96   :  { %1809 = vmatpush.bf16.msra.mxu0 %v2324_v28  ;;  %1822 = vmatpush.bf16.msra.mxu1 %v2452_v29  ;;  %v3139_v24 = vld [vmem:[#allocation2 + $0x6e8] sm:$0xf]  ;;  %v3496_v26 = vld [vmem:[#allocation2 + $0x6f4] sm:$0xf0]  ;;  %v2516_v28 = vor.u32 %v3340_v16, %v2515_v13  ;;  %v3012_v33 = vor.u32 %v3464_v23, %v3011_v21 }
  0x97   :  { %1835 = vmatpush.bf16.msra.mxu2 %v2580_v30  ;;  %v3267_v29 = vld [vmem:[#allocation2 + $0x7e8] sm:$0xf]  ;;  %v3528_v30 = vld [vmem:[#allocation2 + $0x7f4] sm:$0xf0] }
  0x98   :  { %1848 = vmatpush.bf16.msra.mxu3 %v2708_v35  ;;  %v3140_v35 = vor.u32 %v3496_v26, %v3139_v24  ;;  %v2867_v36 = vld [vmem:[#allocation2 + $0x4c8] sm:$0xf]  ;;  %v3428_v39 = vld [vmem:[#allocation2 + $0x4d4] sm:$0xf0]  ;;  %v3268_v42 = vor.u32 %v3528_v30, %v3267_v29 }
  0x99   :  { %v2995_v41 = vld [vmem:[#allocation2 + $0x5c8] sm:$0xf]  ;;  %v3460_v43 = vld [vmem:[#allocation2 + $0x5d4] sm:$0xf0]  ;;  %v2868_v48 = vor.u32 %v3428_v39, %v2867_v36 }
  0x9a   :  { %1810 = vmatpush.bf16.msra.mxu0 %v2308_v44  ;;  %1823 = vmatpush.bf16.msra.mxu1 %v2436_v45  ;;  %v3123_v44 = vld [vmem:[#allocation2 + $0x6c8] sm:$0xf]  ;;  %v3492_v45 = vld [vmem:[#allocation2 + $0x6d4] sm:$0xf0]  ;;  %v2996_v49 = vor.u32 %v3460_v43, %v2995_v41 }
  0x9b   :  { %1836 = vmatpush.bf16.msra.mxu2 %v2564_v46  ;;  %v3251_v46 = vld [vmem:[#allocation2 + $0x7c8] sm:$0xf]  ;;  %v3524_v47 = vld [vmem:[#allocation2 + $0x7d4] sm:$0xf0] }
  0x9c   :  { %1849 = vmatpush.bf16.msra.mxu3 %v2692_v50  ;;  %v3124_v50 = vor.u32 %v3492_v45, %v3123_v44  ;;  %v2851_v51 = vld [vmem:[#allocation2 + $0x4a8] sm:$0xf]  ;;  %v3424_v52 = vld [vmem:[#allocation2 + $0x4b4] sm:$0xf0]  ;;  %v3252_v54 = vor.u32 %v3524_v47, %v3251_v46 }
  0x9d   :  { %v2979_v53 = vld [vmem:[#allocation2 + $0x5a8] sm:$0xf]  ;;  %v3456_v55 = vld [vmem:[#allocation2 + $0x5b4] sm:$0xf0]  ;;  %v2852_v60 = vor.u32 %v3424_v52, %v2851_v51 }
  0x9e   :  { %1811 = vmatpush.bf16.msra.mxu0 %v2292_v56  ;;  %1824 = vmatpush.bf16.msra.mxu1 %v2420_v57  ;;  %v3107_v56 = vld [vmem:[#allocation2 + $0x6a8] sm:$0xf]  ;;  %v3488_v57 = vld [vmem:[#allocation2 + $0x6b4] sm:$0xf0] }
  0x9f   :  { %1837 = vmatpush.bf16.msra.mxu2 %v2548_v58  ;;  %v3235_v58 = vld [vmem:[#allocation2 + $0x7a8] sm:$0xf]  ;;  %v3520_v59 = vld [vmem:[#allocation2 + $0x7b4] sm:$0xf0]  ;;  %v3108_v63 = vor.u32 %v3488_v57, %v3107_v56 }
  0xa0   :  { %1850 = vmatpush.bf16.msra.mxu3 %v2676_v62  ;;  %v2835_v61 = vld [vmem:[#allocation2 + $0x488] sm:$0xf]  ;;  %v2980_v62 = vor.u32 %v3456_v55, %v2979_v53  ;;  %v3420_v0 = vld [vmem:[#allocation2 + $0x494] sm:$0xf0]  ;;  %v3236_v3 = vor.u32 %v3520_v59, %v3235_v58 }
  0xa1   :  { %v2963_v1 = vld [vmem:[#allocation2 + $0x588] sm:$0xf]  ;;  %v3452_v2 = vld [vmem:[#allocation2 + $0x594] sm:$0xf0]  ;;  %v2836_v11 = vor.u32 %v3420_v0, %v2835_v61 }
  0xa2   :  { %1812 = vmatpush.bf16.msra.mxu0 %v2276_v4  ;;  %1825 = vmatpush.bf16.msra.mxu1 %v2404_v7  ;;  %v3091_v4 = vld [vmem:[#allocation2 + $0x688] sm:$0xf]  ;;  %v3484_v5 = vld [vmem:[#allocation2 + $0x694] sm:$0xf0]  ;;  %v2964_v13 = vor.u32 %v3452_v2, %v2963_v1 }
  0xa3   :  { %1838 = vmatpush.bf16.msra.mxu2 %v2532_v10  ;;  %v3219_v7 = vld [vmem:[#allocation2 + $0x788] sm:$0xf]  ;;  %v3516_v10 = vld [vmem:[#allocation2 + $0x794] sm:$0xf0] }
  0xa4   :  { %1851 = vmatpush.bf16.msra.mxu3 %v2660_v14  ;;  %v2819_v12 = vld [vmem:[#allocation2 + $0x468] sm:$0xf]  ;;  %v3092_v14 = vor.u32 %v3484_v5, %v3091_v4  ;;  %v3416_v16 = vld [vmem:[#allocation2 + $0x474] sm:$0xf0]  ;;  %v3220_v19 = vor.u32 %v3516_v10, %v3219_v7 }
  0xa5   :  { %v2947_v17 = vld [vmem:[#allocation2 + $0x568] sm:$0xf]  ;;  %v3448_v20 = vld [vmem:[#allocation2 + $0x574] sm:$0xf0]  ;;  %v2820_v26 = vor.u32 %v3416_v16, %v2819_v12  ;;  %v1620_v45 = vpop.f32.mrf.mxu1  ;;  %v2373_v16 = vld [vmem:[#allocation2 + $0xf8] sm:$0xf0] }
  0xa6   :  { %1813 = vmatpush.bf16.msra.mxu0 %v2260_v22  ;;  %1826 = vmatpush.bf16.msra.mxu1 %v2388_v27  ;;  %v3075_v21 = vld [vmem:[#allocation2 + $0x668] sm:$0xf]  ;;  %v3480_v22 = vld [vmem:[#allocation2 + $0x674] sm:$0xf0] }
  0xa7   :  { %1839 = vmatpush.bf16.msra.mxu2 %v2516_v28  ;;  %v3203_v23 = vld [vmem:[#allocation2 + $0x768] sm:$0xf]  ;;  %v3512_v24 = vld [vmem:[#allocation2 + $0x774] sm:$0xf0]  ;;  %v2948_v28 = vor.u32 %v3448_v20, %v2947_v17  ;;  %v3076_v29 = vor.u32 %v3480_v22, %v3075_v21  ;;  %v3334_v17 = vld [vmem:[#allocation2 + $0x1ec] sm:$0xf] }
  0xa8   :  { %1852 = vmatpush.bf16.msra.mxu3 %v2644_v31  ;;  %v2803_v30 = vld [vmem:[#allocation2 + $0x448] sm:$0xf]  ;;  %v3412_v31 = vld [vmem:[#allocation2 + $0x454] sm:$0xf0]  ;;  %v3366_v20 = vld [vmem:[#allocation2 + $0x2ec] sm:$0xf] }
  0xa9   :  { %1814 = vmatmul.bf16.vlgmr.msra.gmra.mxu0 %v3767_v9  ;;  %1827 = vmatmul.bf16.vlgmr.msra.gmra.mxu1 %v3780_v25  ;;  %v3444_v36 = vld [vmem:[#allocation2 + $0x554] sm:$0xf0]  ;;  %v3059_v39 = vld [vmem:[#allocation2 + $0x648] sm:$0xf]  ;;  %v2804_v44 = vor.u32 %v3412_v31, %v2803_v30  ;;  %v2629_v21 = vld [vmem:[#allocation2 + $0x2f8] sm:$0xf0] }
  0xaa   :  { %1858 = vmatpush.bf16.msrb.mxu0 %v2884_v32  ;;  %1871 = vmatpush.bf16.msrb.mxu1 %v3012_v33  ;;  %v2931_v32 = vld [vmem:[#allocation2 + $0x548] sm:$0xf]  ;;  %v3476_v41 = vld [vmem:[#allocation2 + $0x654] sm:$0xf0] }
  0xab   :  { %1884 = vmatpush.bf16.msrb.mxu2 %v3140_v35  ;;  %1853 = vmatmul.bf16.vlgmr.msra.gmra.mxu3 %v3772_v15  ;;  %v3204_v35 = vor.u32 %v3512_v24, %v3203_v23  ;;  %v3508_v43 = vld [vmem:[#allocation2 + $0x754] sm:$0xf0]  ;;  %v2932_v46 = vor.u32 %v3444_v36, %v2931_v32  ;;  %v3060_v47 = vor.u32 %v3476_v41, %v3059_v39  ;;  %v3171_v57 = vld [vmem:[#allocation2 + $0x728] sm:$0xf]  ;;  %v3330_v36 = vld [vmem:[#allocation2 + $0x1cc] sm:$0xf] }
  0xac   :  { %1897 = vmatpush.bf16.msrb.mxu3 %v3268_v42  ;;  %1840 = vmatmul.bf16.vlgmr.msra.gmra.mxu2 %v3765_v8  ;;  %v3187_v42 = vld [vmem:[#allocation2 + $0x748] sm:$0xf]  ;;  %v3440_v53 = vld [vmem:[#allocation2 + $0x534] sm:$0xf0]  ;;  %v2632_v32 = vor.u32 %v3366_v20, %v2629_v21 }
  0xad   :  { %v3188_v52 = vor.u32 %v3508_v43, %v3187_v42  ;;  %v3472_v55 = vld [vmem:[#allocation2 + $0x634] sm:$0xf0]  ;;  %v3027_v5 = vld [vmem:[#allocation2 + $0x608] sm:$0xf]  ;;  %v1622_v22 = vpop.f32.mrf.mxu1  ;;  %v2485_v42 = vld [vmem:[#allocation2 + $0x1d8] sm:$0xf0] }
  0xae   :  { %1859 = vmatpush.bf16.msrb.mxu0 %v2868_v48  ;;  %1872 = vmatpush.bf16.msrb.mxu1 %v2996_v49  ;;  %v2787_v48 = vld [vmem:[#allocation2 + $0x428] sm:$0xf]  ;;  %v3408_v49 = vld [vmem:[#allocation2 + $0x434] sm:$0xf0]  ;;  %v3362_v43 = vld [vmem:[#allocation2 + $0x2cc] sm:$0xf] }
  0xaf   :  { %1885 = vmatpush.bf16.msrb.mxu2 %v3124_v50  ;;  %v2915_v50 = vld [vmem:[#allocation2 + $0x528] sm:$0xf]  ;;  %v3504_v58 = vld [vmem:[#allocation2 + $0x734] sm:$0xf0]  ;;  %v2788_v61 = vor.u32 %v3408_v49, %v2787_v48  ;;  %v2488_v48 = vor.u32 %v3330_v36, %v2485_v42  ;;  %v2437_v22 = vld [vmem:[#allocation2 + $0x178] sm:$0xf0] }
  0xb0   :  { %1898 = vmatpush.bf16.msrb.mxu3 %v3252_v54  ;;  %v3043_v54 = vld [vmem:[#allocation2 + $0x628] sm:$0xf]  ;;  %v2916_v1 = vor.u32 %v3440_v53, %v2915_v50  ;;  %v3436_v4 = vld [vmem:[#allocation2 + $0x514] sm:$0xf0]  ;;  %v3172_v10 = vor.u32 %v3504_v58, %v3171_v57  ;;  %v3294_v50 = vld [vmem:[#allocation2 + $0xac] sm:$0xf] }
  0xb1   :  { %v3044_v2 = vor.u32 %v3472_v55, %v3043_v54  ;;  %v3155_v12 = vld [vmem:[#allocation2 + $0x708] sm:$0xf]  ;;  %v2469_v54 = vld [vmem:[#allocation2 + $0x1b8] sm:$0xf0]  ;;  %v3358_v55 = vld [vmem:[#allocation2 + $0x2ac] sm:$0xf] }
  0xb2   :  { %1860 = vmatpush.bf16.msrb.mxu0 %v2852_v60  ;;  %1873 = vmatpush.bf16.msrb.mxu1 %v2980_v62  ;;  %v1607_v27 = vpop.f32.mrf.mxu0  ;;  %v1646_v60 = vpop.f32.mrf.mxu3  ;;  %v2771_v62 = vld [vmem:[#allocation2 + $0x408] sm:$0xf]  ;;  %v3390_v57 = vld [vmem:[#allocation2 + $0x3ac] sm:$0xf]  ;;  %v2725_v58 = vld [vmem:[#allocation2 + $0x3b8] sm:$0xf0] }
  0xb3   :  { %1886 = vmatpush.bf16.msrb.mxu2 %v3108_v63  ;;  %v1608_v33 = vadd.f32 %v1607_v27, %v310_v18  ;;  %v3404_v63 = vld [vmem:[#allocation2 + $0x414] sm:$0xf0]  ;;  %v2757_v27 = vld [vmem:[#allocation2 + $0x3f8] sm:$0xf0] }
  0xb4   :  { %1899 = vmatpush.bf16.msrb.mxu3 %v3236_v3  ;;  %v2899_v3 = vld [vmem:[#allocation2 + $0x508] sm:$0xf]  ;;  %v2772_v18 = vor.u32 %v3404_v63, %v2771_v62  ;;  %v3290_v62 = vld [vmem:[#allocation2 + $0x8c] sm:$0xf]  ;;  %v2325_v63 = vld [vmem:[#allocation2 + $0x98] sm:$0xf0] }
  0xb5   :  { %v1621_v51 = vadd.f32 %v1620_v45, %v1608_v33  ;;  %v2900_v23 = vor.u32 %v3436_v4, %v2899_v3  ;;  %v3298_v33 = vld [vmem:[#allocation2 + $0xcc] sm:$0xf]  ;;  %v2581_v4 = vld [vmem:[#allocation2 + $0x298] sm:$0xf0] }
  0xb6   :  { %1861 = vmatpush.bf16.msrb.mxu0 %v2836_v11  ;;  %1874 = vmatpush.bf16.msrb.mxu1 %v2964_v13  ;;  %v3468_v11 = vld [vmem:[#allocation2 + $0x614] sm:$0xf0]  ;;  %v3394_v45 = vld [vmem:[#allocation2 + $0x3cc] sm:$0xf]  ;;  %v2549_v42 = vld [vmem:[#allocation2 + $0x258] sm:$0xf0] }
  0xb7   :  { %1887 = vmatpush.bf16.msrb.mxu2 %v3092_v14  ;;  %v1633_v56 = vpop.f32.mrf.mxu2  ;;  %v3500_v13 = vld [vmem:[#allocation2 + $0x714] sm:$0xf0]  ;;  %v3302_v14 = vld [vmem:[#allocation2 + $0xec] sm:$0xf]  ;;  %v3028_v24 = vor.u32 %v3468_v11, %v3027_v5  ;;  %v2328_v11 = vor.u32 %v3290_v62, %v2325_v63 }
  0xb8   :  { %1900 = vmatpush.bf16.msrb.mxu3 %v3220_v19  ;;  %v1634_v59 = vadd.f32 %v1633_v56, %v1621_v51  ;;  %v2501_v19 = vld [vmem:[#allocation2 + $0x1f8] sm:$0xf0]  ;;  %v3354_v3 = vld [vmem:[#allocation2 + $0x28c] sm:$0xf] }
  0xb9   :  { %v2504_v31 = vor.u32 %v3334_v17, %v2501_v19  ;;  %v2341_v51 = vld [vmem:[#allocation2 + $0xb8] sm:$0xf0]  ;;  %v3386_v5 = vld [vmem:[#allocation2 + $0x38c] sm:$0xf] }
  0xba   :  { %1862 = vmatpush.bf16.msrb.mxu0 %v2820_v26  ;;  %1875 = vmatpush.bf16.msrb.mxu1 %v2948_v28  ;;  %v1609_v0 = vpop.f32.mrf.mxu0  ;;  %v3825_v7 = vadd.f32 %v1646_v60, %v1634_v59  ;;  %v3398_v26 = vld [vmem:[#allocation2 + $0x3ec] sm:$0xf]  ;;  %v3156_v28 = vor.u32 %v3500_v13, %v3155_v12  ;;  %v1648_v39 = vpop.f32.mrf.mxu3  ;;  %v2597_v56 = vld [vmem:[#allocation2 + $0x2b8] sm:$0xf0]  ;;  %v2344_v59 = vor.u32 %v3294_v50, %v2341_v51 }
  0xbb   :  { %1888 = vmatpush.bf16.msrb.mxu2 %v3076_v29  ;;  %v2376_v29 = vor.u32 %v3302_v14, %v2373_v16  ;;  %v2760_v41 = vor.u32 %v3398_v26, %v2757_v27  ;;  %v3322_v0 = vld [vmem:[#allocation2 + $0x18c] sm:$0xf]  ;;  %v2584_v14 = vor.u32 %v3354_v3, %v2581_v4  ;;  %v2309_v17 = vld [vmem:[#allocation2 + $0x78] sm:$0xf0] }
  0xbc   :  { %1901 = vmatpush.bf16.msrb.mxu3 %v3204_v35  ;;  %v2357_v35 = vld [vmem:[#allocation2 + $0xd8] sm:$0xf0]  ;;  %v3286_v16 = vld [vmem:[#allocation2 + $0x6c] sm:$0xf] }
  0xbd   :  { %v3382_v26 = vld [vmem:[#allocation2 + $0x36c] sm:$0xf]  ;;  %v2693_v27 = vld [vmem:[#allocation2 + $0x378] sm:$0xf0] }
  0xbe   :  { %1863 = vmatpush.bf16.msrb.mxu0 %v2804_v44  ;;  %1876 = vmatpush.bf16.msrb.mxu1 %v2932_v46  ;;  %v2613_v44 = vld [vmem:[#allocation2 + $0x2d8] sm:$0xf0]  ;;  %v3274_v63 = vld [vmem:[#allocation2 + $0xc] sm:$0xf] }
  0xbf   :  { %1889 = vmatpush.bf16.msrb.mxu2 %v3060_v47  ;;  %v1635_v30 = vpop.f32.mrf.mxu2  ;;  %v2741_v46 = vld [vmem:[#allocation2 + $0x3d8] sm:$0xf0]  ;;  %v2360_v47 = vor.u32 %v3298_v33, %v2357_v35  ;;  %v2616_v49 = vor.u32 %v3362_v43, %v2613_v44  ;;  %v3314_v35 = vld [vmem:[#allocation2 + $0x14c] sm:$0xf] }
  0xc0   :  { %1902 = vmatpush.bf16.msrb.mxu3 %v3188_v52  ;;  %v3326_v52 = vld [vmem:[#allocation2 + $0x1ac] sm:$0xf]  ;;  %v2744_v53 = vor.u32 %v3394_v45, %v2741_v46  ;;  %v2293_v33 = vld [vmem:[#allocation2 + $0x58] sm:$0xf0] }
  0xc1   :  { %v2472_v60 = vor.u32 %v3326_v52, %v2469_v54  ;;  %v2421_v39 = vld [vmem:[#allocation2 + $0x158] sm:$0xf0]  ;;  %v3378_v45 = vld [vmem:[#allocation2 + $0x34c] sm:$0xf] }
  0xc2   :  { %1864 = vmatpush.bf16.msrb.mxu0 %v2788_v61  ;;  %1877 = vmatpush.bf16.msrb.mxu1 %v2916_v1  ;;  %v2600_v61 = vor.u32 %v3358_v55, %v2597_v56  ;;  %v2728_v1 = vor.u32 %v3390_v57, %v2725_v58  ;;  %v2677_v46 = vld [vmem:[#allocation2 + $0x358] sm:$0xf0]  ;;  %v2424_v50 = vor.u32 %v3314_v35, %v2421_v39  ;;  %v3278_v52 = vld [vmem:[#allocation2 + $0x2c] sm:$0xf] }
  0xc3   :  { %1890 = vmatpush.bf16.msrb.mxu2 %v3044_v2  ;;  %v2453_v2 = vld [vmem:[#allocation2 + $0x198] sm:$0xf0]  ;;  %v3310_v54 = vld [vmem:[#allocation2 + $0x12c] sm:$0xf]  ;;  %v2680_v56 = vor.u32 %v3378_v45, %v2677_v46 }
  0xc4   :  { %1903 = vmatpush.bf16.msrb.mxu3 %v3172_v10  ;;  %v2709_v10 = vld [vmem:[#allocation2 + $0x398] sm:$0xf0]  ;;  %v2456_v13 = vor.u32 %v3322_v0, %v2453_v2  ;;  %v3342_v58 = vld [vmem:[#allocation2 + $0x22c] sm:$0xf] }
  0xc5   :  { %v2712_v21 = vor.u32 %v3386_v5, %v2709_v10  ;;  %v2405_v57 = vld [vmem:[#allocation2 + $0x138] sm:$0xf0]  ;;  %v3306_v3 = vld [vmem:[#allocation2 + $0x10c] sm:$0xf] }
  0xc6   :  { %1865 = vmatpush.bf16.msrb.mxu0 %v2772_v18  ;;  %1878 = vmatpush.bf16.msrb.mxu1 %v2900_v23  ;;  %v1659_v12 = vpop.f32.mrf.mxu0  ;;  %v3318_v18 = vld [vmem:[#allocation2 + $0x16c] sm:$0xf]  ;;  %v1672_v20 = vpop.f32.mrf.mxu1  ;;  %v2261_v0 = vld [vmem:[#allocation2 + $0x18] sm:$0xf0] }
  0xc7   :  { %1891 = vmatpush.bf16.msrb.mxu2 %v3028_v24  ;;  %v1660_v19 = vadd.f32 %v1659_v12, %v3825_v7  ;;  %v3350_v23 = vld [vmem:[#allocation2 + $0x26c] sm:$0xf]  ;;  %v2565_v24 = vld [vmem:[#allocation2 + $0x278] sm:$0xf0]  ;;  %v2440_v30 = vor.u32 %v3318_v18, %v2437_v22  ;;  %v2696_v7 = vor.u32 %v3382_v26, %v2693_v27 }
  0xc8   :  { %1904 = vmatpush.bf16.msrb.mxu3 %v3156_v28  ;;  %v2389_v4 = vld [vmem:[#allocation2 + $0x118] sm:$0xf0]  ;;  %v3338_v5 = vld [vmem:[#allocation2 + $0x20c] sm:$0xf] }
  0xc9   :  { %1866 = vmatmul.bf16.vlgmr.msrb.gmra.mxu0 %v3797_v37  ;;  %1879 = vmatmul.bf16.vlgmr.msrb.gmra.mxu1 %v3801_v40  ;;  %v1673_v28 = vadd.f32 %v1672_v20, %v1660_v19  ;;  %v2517_v12 = vld [vmem:[#allocation2 + $0x218] sm:$0xf0]  ;;  %v3462_v19 = vld [vmem:[#allocation2 + $0x5ec] sm:$0xf]  ;;  %v2264_v20 = vor.u32 %v3274_v63, %v2261_v0 }
  0xca   :  { %1910 = vmatpush.bf16.msra.mxu0 %v2376_v29  ;;  %1923 = vmatpush.bf16.msra.mxu1 %v2504_v31  ;;  %v2312_v29 = vor.u32 %v3286_v16, %v2309_v17  ;;  %v2568_v31 = vor.u32 %v3350_v23, %v2565_v24  ;;  %v3430_v17 = vld [vmem:[#allocation2 + $0x4ec] sm:$0xf]  ;;  %v2885_v18 = vld [vmem:[#allocation2 + $0x4f8] sm:$0xf0]  ;;  %v2392_v24 = vor.u32 %v3306_v3, %v2389_v4 }
  0xcb   :  { %1936 = vmatpush.bf16.msra.mxu2 %v2632_v32  ;;  %1905 = vmatmul.bf16.vlgmr.msrb.gmra.mxu3 %v3799_v38  ;;  %v3282_v32 = vld [vmem:[#allocation2 + $0x4c] sm:$0xf]  ;;  %v3141_v23 = vld [vmem:[#allocation2 + $0x6f8] sm:$0xf0]  ;;  %v2520_v26 = vor.u32 %v3338_v5, %v2517_v12 }
  0xcc   :  { %1949 = vmatpush.bf16.msra.mxu3 %v2760_v41  ;;  %1892 = vmatmul.bf16.vlgmr.msrb.gmra.mxu2 %v3795_v34  ;;  %v3346_v41 = vld [vmem:[#allocation2 + $0x24c] sm:$0xf]  ;;  %v2869_v35 = vld [vmem:[#allocation2 + $0x4d8] sm:$0xf0] }
  0xcd   :  { %v2552_v51 = vor.u32 %v3346_v41, %v2549_v42  ;;  %v3494_v22 = vld [vmem:[#allocation2 + $0x6ec] sm:$0xf]  ;;  %v2997_v39 = vld [vmem:[#allocation2 + $0x5d8] sm:$0xf0] }
  0xce   :  { %1911 = vmatpush.bf16.msra.mxu0 %v2360_v47  ;;  %1924 = vmatpush.bf16.msra.mxu1 %v2488_v48  ;;  %v1698_v44 = vpop.f32.mrf.mxu3  ;;  %v2296_v47 = vor.u32 %v3282_v32, %v2293_v33  ;;  %v1674_v55 = vpop.f32.mrf.mxu1  ;;  %v3526_v27 = vld [vmem:[#allocation2 + $0x7ec] sm:$0xf]  ;;  %v3144_v32 = vor.u32 %v3494_v22, %v3141_v23  ;;  %v3125_v42 = vld [vmem:[#allocation2 + $0x6d8] sm:$0xf0] }
  0xcf   :  { %1937 = vmatpush.bf16.msra.mxu2 %v2616_v49  ;;  %v1685_v36 = vpop.f32.mrf.mxu2  ;;  %v1661_v49 = vpop.f32.mrf.mxu0  ;;  %v3426_v33 = vld [vmem:[#allocation2 + $0x4cc] sm:$0xf]  ;;  %v3109_v55 = vld [vmem:[#allocation2 + $0x6b8] sm:$0xf0] }
  0xd0   :  { %1950 = vmatpush.bf16.msra.mxu3 %v2744_v53  ;;  %v1686_v43 = vadd.f32 %v1685_v36, %v1673_v28  ;;  %v2277_v53 = vld [vmem:[#allocation2 + $0x38] sm:$0xf0]  ;;  %v3458_v36 = vld [vmem:[#allocation2 + $0x5cc] sm:$0xf]  ;;  %v2872_v45 = vor.u32 %v3426_v33, %v2869_v35 }
  0xd1   :  { %v2280_v62 = vor.u32 %v3278_v52, %v2277_v53  ;;  %v3269_v28 = vld [vmem:[#allocation2 + $0x7f8] sm:$0xf0]  ;;  %v3490_v41 = vld [vmem:[#allocation2 + $0x6cc] sm:$0xf]  ;;  %v3000_v46 = vor.u32 %v3458_v36, %v2997_v39 }
  0xd2   :  { %1912 = vmatpush.bf16.msra.mxu0 %v2344_v59  ;;  %1925 = vmatpush.bf16.msra.mxu1 %v2472_v60  ;;  %v3832_v48 = vadd.f32 %v1698_v44, %v1686_v43  ;;  %v2533_v59 = vld [vmem:[#allocation2 + $0x238] sm:$0xf0]  ;;  %v3374_v60 = vld [vmem:[#allocation2 + $0x32c] sm:$0xf] }
  0xd3   :  { %1938 = vmatpush.bf16.msra.mxu2 %v2600_v61  ;;  %v2661_v61 = vld [vmem:[#allocation2 + $0x338] sm:$0xf0]  ;;  %v2536_v2 = vor.u32 %v3342_v58, %v2533_v59  ;;  %v3522_v43 = vld [vmem:[#allocation2 + $0x7cc] sm:$0xf] }
  0xd4   :  { %1951 = vmatpush.bf16.msra.mxu3 %v2728_v1  ;;  %v2408_v1 = vor.u32 %v3310_v54, %v2405_v57  ;;  %v3253_v44 = vld [vmem:[#allocation2 + $0x7d8] sm:$0xf0]  ;;  %v3422_v49 = vld [vmem:[#allocation2 + $0x4ac] sm:$0xf] }
  0xd5   :  { %v3256_v52 = vor.u32 %v3522_v43, %v3253_v44  ;;  %v2981_v53 = vld [vmem:[#allocation2 + $0x5b8] sm:$0xf0]  ;;  %v3486_v54 = vld [vmem:[#allocation2 + $0x6ac] sm:$0xf] }
  0xd6   :  { %1913 = vmatpush.bf16.msra.mxu0 %v2328_v11  ;;  %1926 = vmatpush.bf16.msra.mxu1 %v2456_v13  ;;  %v2664_v11 = vor.u32 %v3374_v60, %v2661_v61  ;;  %v3370_v13 = vld [vmem:[#allocation2 + $0x30c] sm:$0xf]  ;;  %v1700_v16 = vpop.f32.mrf.mxu3  ;;  %v3237_v57 = vld [vmem:[#allocation2 + $0x7b8] sm:$0xf0]  ;;  %v3112_v60 = vor.u32 %v3486_v54, %v3109_v55 }
  0xd7   :  { %1939 = vmatpush.bf16.msra.mxu2 %v2584_v14  ;;  %v1687_v10 = vpop.f32.mrf.mxu2  ;;  %v2645_v14 = vld [vmem:[#allocation2 + $0x318] sm:$0xf0]  ;;  %v3418_v61 = vld [vmem:[#allocation2 + $0x48c] sm:$0xf] }
  0xd8   :  { %1952 = vmatpush.bf16.msra.mxu3 %v2712_v21  ;;  %v3013_v21 = vld [vmem:[#allocation2 + $0x5f8] sm:$0xf0]  ;;  %v3514_v3 = vld [vmem:[#allocation2 + $0x78c] sm:$0xf] }
  0xd9   :  { %v2965_v0 = vld [vmem:[#allocation2 + $0x598] sm:$0xf0]  ;;  %v3414_v10 = vld [vmem:[#allocation2 + $0x46c] sm:$0xf] }
  0xda   :  { %1914 = vmatpush.bf16.msra.mxu0 %v2312_v29  ;;  %1927 = vmatpush.bf16.msra.mxu1 %v2440_v30  ;;  %v2648_v29 = vor.u32 %v3370_v13, %v2645_v14  ;;  %v2888_v30 = vor.u32 %v3430_v17, %v2885_v18  ;;  %v3446_v12 = vld [vmem:[#allocation2 + $0x56c] sm:$0xf]  ;;  %v2949_v16 = vld [vmem:[#allocation2 + $0x578] sm:$0xf0] }
  0xdb   :  { %1940 = vmatpush.bf16.msra.mxu2 %v2568_v31  ;;  %v3016_v31 = vor.u32 %v3462_v19, %v3013_v21  ;;  %v3478_v17 = vld [vmem:[#allocation2 + $0x66c] sm:$0xf]  ;;  %v3077_v18 = vld [vmem:[#allocation2 + $0x678] sm:$0xf0]  ;;  %v2952_v22 = vor.u32 %v3446_v12, %v2949_v16 }
  0xdc   :  { %1953 = vmatpush.bf16.msra.mxu3 %v2696_v7  ;;  %v3272_v7 = vor.u32 %v3526_v27, %v3269_v28  ;;  %v3510_v19 = vld [vmem:[#allocation2 + $0x76c] sm:$0xf]  ;;  %v3080_v23 = vor.u32 %v3478_v17, %v3077_v18  ;;  %v3189_v36 = vld [vmem:[#allocation2 + $0x758] sm:$0xf0]  ;;  %v3670_v18 = vld [vmem:[%s3971_s3 + $0x70] sm:$0xff]  }
  0xdd   :  { %v3442_v27 = vld [vmem:[#allocation2 + $0x54c] sm:$0xf]  ;;  %v2789_v44 = vld [vmem:[#allocation2 + $0x438] sm:$0xf0] }
  0xde   :  { %1915 = vmatpush.bf16.msra.mxu0 %v2296_v47  ;;  %1928 = vmatpush.bf16.msra.mxu1 %v2424_v50  ;;  %v3128_v47 = vor.u32 %v3490_v41, %v3125_v42  ;;  %v2853_v50 = vld [vmem:[#allocation2 + $0x4b8] sm:$0xf0]  ;;  %v3506_v35 = vld [vmem:[#allocation2 + $0x74c] sm:$0xf] }
  0xdf   :  { %1941 = vmatpush.bf16.msra.mxu2 %v2552_v51  ;;  %v3454_v51 = vld [vmem:[#allocation2 + $0x5ac] sm:$0xf]  ;;  %v2856_v58 = vor.u32 %v3422_v49, %v2853_v50  ;;  %v2917_v49 = vld [vmem:[#allocation2 + $0x538] sm:$0xf0] }
  0xe0   :  { %1954 = vmatpush.bf16.msra.mxu3 %v2680_v56  ;;  %v3518_v56 = vld [vmem:[#allocation2 + $0x7ac] sm:$0xf]  ;;  %v2984_v59 = vor.u32 %v3454_v51, %v2981_v53  ;;  %v3045_v51 = vld [vmem:[#allocation2 + $0x638] sm:$0xf0] }
  0xe1   :  { %v3240_v63 = vor.u32 %v3518_v56, %v3237_v57  ;;  %v3406_v43 = vld [vmem:[#allocation2 + $0x42c] sm:$0xf]  ;;  %v3173_v53 = vld [vmem:[#allocation2 + $0x738] sm:$0xf0] }
  0xe2   :  { %1916 = vmatpush.bf16.msra.mxu0 %v2280_v62  ;;  %1929 = vmatpush.bf16.msra.mxu1 %v2408_v1  ;;  %v2837_v62 = vld [vmem:[#allocation2 + $0x498] sm:$0xf0]  ;;  %v3482_v1 = vld [vmem:[#allocation2 + $0x68c] sm:$0xf]  ;;  %v2792_v54 = vor.u32 %v3406_v43, %v2789_v44 }
  0xe3   :  { %1942 = vmatpush.bf16.msra.mxu2 %v2536_v2  ;;  %v3093_v2 = vld [vmem:[#allocation2 + $0x698] sm:$0xf0]  ;;  %v3470_v50 = vld [vmem:[#allocation2 + $0x62c] sm:$0xf] }
  0xe4   :  { %1955 = vmatpush.bf16.msra.mxu3 %v2664_v11  ;;  %v3096_v5 = vor.u32 %v3482_v1, %v3093_v2  ;;  %v2821_v11 = vld [vmem:[#allocation2 + $0x478] sm:$0xf0]  ;;  %v3048_v56 = vor.u32 %v3470_v50, %v3045_v51  ;;  %v3402_v57 = vld [vmem:[#allocation2 + $0x40c] sm:$0xf] }
  0xe5   :  { %v2824_v21 = vor.u32 %v3414_v10, %v2821_v11  ;;  %v3498_v1 = vld [vmem:[#allocation2 + $0x70c] sm:$0xf]  ;;  %v3157_v2 = vld [vmem:[#allocation2 + $0x718] sm:$0xf0] }
  0xe6   :  { %1917 = vmatpush.bf16.msra.mxu0 %v2264_v20  ;;  %1930 = vmatpush.bf16.msra.mxu1 %v2392_v24  ;;  %v3838_v4 = vpop.f32.mrf.mxu0  ;;  %v3840_v13 = vpop.f32.mrf.mxu1  ;;  %v3205_v20 = vld [vmem:[#allocation2 + $0x778] sm:$0xf0]  ;;  %v3410_v24 = vld [vmem:[#allocation2 + $0x44c] sm:$0xf]  ;;  %v3160_v11 = vor.u32 %v3498_v1, %v3157_v2 }
  0xe7   :  { %1943 = vmatpush.bf16.msra.mxu2 %v2520_v26  ;;  %v2805_v26 = vld [vmem:[#allocation2 + $0x458] sm:$0xf0] }
  0xe8   :  { %1956 = vmatpush.bf16.msra.mxu3 %v2648_v29  ;;  %v3208_v29 = vor.u32 %v3510_v19, %v3205_v20  ;;  %v3659_v44 = vld [vmem:[%s3971_s3 + $0x18] sm:$0xff]  }
  0xe9   :  { %1918 = vmatmul.bf16.vlgmr.msra.gmra.mxu0 %v3767_v9  ;;  %1931 = vmatmul.bf16.vlgmr.msra.gmra.mxu1 %v3780_v25  ;;  %v3221_v9 = vld [vmem:[#allocation2 + $0x798] sm:$0xf0] }
  0xea   :  { %1962 = vmatpush.bf16.msrb.mxu0 %v2888_v30  ;;  %1975 = vmatpush.bf16.msrb.mxu1 %v3016_v31  ;;  %v3224_v14 = vor.u32 %v3514_v3, %v3221_v9  ;;  %v2933_v30 = vld [vmem:[#allocation2 + $0x558] sm:$0xf0]  ;;  %v3474_v31 = vld [vmem:[#allocation2 + $0x64c] sm:$0xf]  ;;  %v311_v9 = vperm.slane %v3822_v6, 1  ;;  %v3662_v6 = vld [vmem:[%s3971_s3 + $0x30] sm:$0xff]  }
  0xeb   :  { %1988 = vmatpush.bf16.msrb.mxu2 %v3144_v32  ;;  %1957 = vmatmul.bf16.vlgmr.msra.gmra.mxu3 %v3772_v15  ;;  %v2840_v15 = vor.u32 %v3418_v61, %v2837_v62  ;;  %v3061_v32 = vld [vmem:[#allocation2 + $0x658] sm:$0xf0]  ;;  %v2936_v41 = vor.u32 %v3442_v27, %v2933_v30  ;;  %v3556_v20 = vunpack.c.h.bf16 %v3662_v6  ;;  %v3587_v27 = vunpack.c.l.bf16 %v3670_v18  ;;  %v3660_v30 = vld [vmem:[%s3971_s3 + $0x20] sm:$0xff]  }
  0xec   :  { %2001 = vmatpush.bf16.msrb.mxu3 %v3272_v7  ;;  %1944 = vmatmul.bf16.vlgmr.msra.gmra.mxu2 %v3765_v8  ;;  %v3450_v8 = vld [vmem:[#allocation2 + $0x58c] sm:$0xf]  ;;  %v2808_v7 = vor.u32 %v3410_v24, %v2805_v26  ;;  %v3064_v42 = vor.u32 %v3474_v31, %v3061_v32  ;;  %v2901_v62 = vld [vmem:[#allocation2 + $0x518] sm:$0xf0]  ;;  %v1712_v16 = vadd.f32 %v3838_v4, %v311_v9  ;;  %v3668_v31 = vld [vmem:[%s3971_s3 + $0x60] sm:$0xff]  }
  0xed   :  { %v2968_v25 = vor.u32 %v3450_v8, %v2965_v0  ;;  %v3466_v8 = vld [vmem:[#allocation2 + $0x60c] sm:$0xf]  ;;  %v3663_v3 = vld [vmem:[%s3971_s3 + $0x38] sm:$0xff]   ;;  %v3678_v32 = vld [vmem:[%s3971_s3 + $0xb0] sm:$0xff]   ;;  %v3580_v43 = vunpack.c.h.bf16 %v3668_v31 }
  0xee   :  { %1963 = vmatpush.bf16.msrb.mxu0 %v2872_v45  ;;  %1976 = vmatpush.bf16.msrb.mxu1 %v3000_v46  ;;  %v3844_v33 = vpop.f32.mrf.mxu3  ;;  %v1713_v39 = vpop.f32.mrf.mxu0  ;;  %v3438_v45 = vld [vmem:[#allocation2 + $0x52c] sm:$0xf]  ;;  %v3560_v12 = vunpack.c.h.bf16 %v3663_v3  ;;  %v3559_v17 = vunpack.c.l.bf16 %v3663_v3  ;;  %v1725_v4 = vadd.f32 %v3840_v13, %v1712_v16 }
  0xef   :  { %1989 = vmatpush.bf16.msrb.mxu2 %v3128_v47  ;;  %v3842_v28 = vpop.f32.mrf.mxu2  ;;  %v1726_v46 = vpop.f32.mrf.mxu1  ;;  %v3192_v47 = vor.u32 %v3506_v35, %v3189_v36  ;;  %v2920_v55 = vor.u32 %v3438_v45, %v2917_v49  ;;  %v3669_v13 = vld [vmem:[%s3971_s3 + $0x68] sm:$0xff]   ;;  %v3620_v36 = vunpack.c.h.bf16 %v3678_v32  ;;  %v3548_v39 = vunpack.c.h.bf16 %v3660_v30 }
  0xf0   :  { %2002 = vmatpush.bf16.msrb.mxu3 %v3256_v52  ;;  %v3502_v52 = vld [vmem:[#allocation2 + $0x72c] sm:$0xf]  ;;  %v3547_v45 = vunpack.c.l.bf16 %v3660_v30  ;;  %v3667_v46 = vld [vmem:[%s3971_s3 + $0x58] sm:$0xff]   ;;  %v3544_v49 = vunpack.c.h.bf16 %v3659_v44 }
  0xf1   :  { %v3176_v61 = vor.u32 %v3502_v52, %v3173_v53  ;;  %v3576_v53 = vunpack.c.h.bf16 %v3667_v46  ;;  %v3657_v3 = vld [vmem:[%s3971_s3 + $0x8] sm:$0xff]  }
  0xf2   :  { %1964 = vmatpush.bf16.msrb.mxu0 %v2856_v58  ;;  %1977 = vmatpush.bf16.msrb.mxu1 %v2984_v59  ;;  %v2773_v58 = vld [vmem:[#allocation2 + $0x418] sm:$0xf0]  ;;  %v3434_v59 = vld [vmem:[#allocation2 + $0x50c] sm:$0xf] }
  0xf3   :  { %1990 = vmatpush.bf16.msrb.mxu2 %v3112_v60 }
  0xf4   :  { %2003 = vmatpush.bf16.msrb.mxu3 %v3240_v63  ;;  %v3029_v63 = vld [vmem:[#allocation2 + $0x618] sm:$0xf0] }
  0xf5   :  { %v3032_v10 = vor.u32 %v3466_v8, %v3029_v63 }
  0xf6   :  { %1965 = vmatpush.bf16.msrb.mxu0 %v2840_v15  ;;  %1978 = vmatpush.bf16.msrb.mxu1 %v2968_v25  ;;  %v1752_v0 = vpop.f32.mrf.mxu3  ;;  %v2776_v15 = vor.u32 %v3402_v57, %v2773_v58  ;;  %v3671_v25 = vld [vmem:[%s3971_s3 + $0x78] sm:$0xff]   ;;  %v3676_v57 = vld [vmem:[%s3971_s3 + $0xa0] sm:$0xff]   ;;  %v3543_v58 = vunpack.c.l.bf16 %v3659_v44 }
  0xf7   :  { %1991 = vmatpush.bf16.msrb.mxu2 %v3096_v5  ;;  %v1739_v60 = vpop.f32.mrf.mxu2  ;;  %v2904_v5 = vor.u32 %v3434_v59, %v2901_v62  ;;  %v3591_v19 = vunpack.c.l.bf16 %v3671_v25  ;;  %v3666_v59 = vld [vmem:[%s3971_s3 + $0x50] sm:$0xff]   ;;  %v3611_v1 = vunpack.c.l.bf16 %v3676_v57 }
  0xf8   :  { %2004 = vmatpush.bf16.msrb.mxu3 %v3224_v14  ;;  %v3592_v14 = vunpack.c.h.bf16 %v3671_v25  ;;  %v3612_v60 = vunpack.c.h.bf16 %v3676_v57  ;;  %v3572_v2 = vunpack.c.h.bf16 %v3666_v59  ;;  %v3675_v25 = vld [vmem:[%s3971_s3 + $0x98] sm:$0xff]  }
  0xf9   :  { %v3607_v16 = vunpack.c.l.bf16 %v3675_v25 }
  0xfa   :  { %1966 = vmatpush.bf16.msrb.mxu0 %v2824_v21  ;;  %1979 = vmatpush.bf16.msrb.mxu1 %v2952_v22  ;;  %v3679_v21 = vld [vmem:[%s3971_s3 + $0xb8] sm:$0xff]   ;;  %v3588_v22 = vunpack.c.h.bf16 %v3670_v18 }
  0xfb   :  { %1992 = vmatpush.bf16.msrb.mxu2 %v3080_v23  ;;  %v3661_v23 = vld [vmem:[%s3971_s3 + $0x28] sm:$0xff]   ;;  %v3624_v24 = vunpack.c.h.bf16 %v3679_v21  ;;  %v3623_v26 = vunpack.c.l.bf16 %v3679_v21 }
  0xfc   :  { %2005 = vmatpush.bf16.msrb.mxu3 %v3208_v29  ;;  %v3584_v29 = vunpack.c.h.bf16 %v3669_v13 }
  0xfe   :  { %1967 = vmatpush.bf16.msrb.mxu0 %v2808_v7  ;;  %1980 = vmatpush.bf16.msrb.mxu1 %v2936_v41 }
  0xff   :  { %1993 = vmatpush.bf16.msrb.mxu2 %v3064_v42  ;;  %v3619_v42 = vunpack.c.l.bf16 %v3678_v32 }
 0x100   :  { %2006 = vmatpush.bf16.msrb.mxu3 %v3192_v47  ;;  %v3579_v47 = vunpack.c.l.bf16 %v3668_v31 }
 0x102   :  { %1968 = vmatpush.bf16.msrb.mxu0 %v2792_v54  ;;  %1981 = vmatpush.bf16.msrb.mxu1 %v2920_v55  ;;  %v3658_v54 = vld [vmem:[%s3971_s3 + $0x10] sm:$0xff]  }
 0x103   :  { %1994 = vmatpush.bf16.msrb.mxu2 %v3048_v56  ;;  %v3540_v8 = vunpack.c.h.bf16 %v3658_v54  ;;  %v3539_v9 = vunpack.c.l.bf16 %v3658_v54  ;;  %v3687_v54 = vld [vmem:[%s3971_s3 + $0xf8] sm:$0xff]  }
 0x104   :  { %2007 = vmatpush.bf16.msrb.mxu3 %v3176_v61  ;;  %v3575_v61 = vunpack.c.l.bf16 %v3667_v46 }
 0x106   :  { %1969 = vmatpush.bf16.msrb.mxu0 %v2776_v15  ;;  %1982 = vmatpush.bf16.msrb.mxu1 %v2904_v5  ;;  %v1763_v35 = vpop.f32.mrf.mxu0  ;;  %v1776_v41 = vpop.f32.mrf.mxu1  ;;  %v3665_v15 = vld [vmem:[%s3971_s3 + $0x48] sm:$0xff]   ;;  %v3571_v5 = vunpack.c.l.bf16 %v3666_v59  ;;  %v3655_v59 = vunpack.c.l.bf16 %v3687_v54 }
 0x107   :  { %1995 = vmatpush.bf16.msrb.mxu2 %v3032_v10  ;;  %v3608_v10 = vunpack.c.h.bf16 %v3675_v25 }
 0x108   :  { %2008 = vmatpush.bf16.msrb.mxu3 %v3160_v11 }
 0x109   :  { %1970 = vmatmul.bf16.vlgmr.msrb.gmra.mxu0 %v3797_v37  ;;  %1983 = vmatmul.bf16.vlgmr.msrb.gmra.mxu1 %v3801_v40  ;;  %v3555_v37 = vunpack.c.l.bf16 %v3662_v6  ;;  %v3552_v40 = vunpack.c.h.bf16 %v3661_v23  ;;  %v3568_v6 = vunpack.c.h.bf16 %v3665_v15 }
 0x10a   :  { %2150 = vmatpush.msra.mxu0 %v3560_v12  ;;  %2170 = vmatpush.msra.mxu1 %v3592_v14  ;;  %v3536_v12 = vunpack.c.h.bf16 %v3657_v3 }
 0x10b   :  { %1996 = vmatmul.bf16.vlgmr.msrb.gmra.mxu2 %v3795_v34  ;;  %2009 = vmatmul.bf16.vlgmr.msrb.gmra.mxu3 %v3799_v38  ;;  %v1738_v34 = vadd.f32 %v3842_v28, %v1725_v4  ;;  %v3551_v38 = vunpack.c.l.bf16 %v3661_v23  ;;  %v3583_v28 = vunpack.c.l.bf16 %v3669_v13  ;;  %v3567_v4 = vunpack.c.l.bf16 %v3665_v15 }
 0x10c   :  { %2151 = vmatpush.msra.mxu0 %v3559_v17  ;;  %2171 = vmatpush.msra.mxu1 %v3591_v19  ;;  %v3530_v17 = vld [vmem:[%s3971_s3] sm:$0xff]   ;;  %v3535_v19 = vunpack.c.l.bf16 %v3657_v3  ;;  %v2014_v13 = vmax.f32 %v3832_v48, 0.0 }
 0x10d   :  { %2190 = vmatpush.msra.mxu2 %v3624_v24  ;;  %v1751_v7 = vadd.f32 %v3844_v33, %v1738_v34  ;;  %v3677_v33 = vld [vmem:[%s3971_s3 + $0xa8] sm:$0xff]   ;;  %v3531_v24 = vunpack.c.l.bf16 %v3530_v17 }
 0x10e   :  { %2152 = vmatpush.msra.mxu0 %v3556_v20  ;;  %2172 = vmatpush.msra.mxu1 %v3588_v22  ;;  %v3616_v52 = vunpack.c.h.bf16 %v3677_v33  ;;  %v1802_v55 = vpop.f32.mrf.mxu3  ;;  %v3615_v56 = vunpack.c.l.bf16 %v3677_v33  ;;  %v1765_v62 = vpop.f32.mrf.mxu0  ;;  %v3664_v20 = vld [vmem:[%s3971_s3 + $0x40] sm:$0xff]   ;;  %v3532_v22 = vunpack.c.h.bf16 %v3530_v17 }
 0x10f   :  { %2191 = vmatpush.msra.mxu2 %v3623_v26  ;;  %v1764_v50 = vadd.f32 %v1763_v35, %v1751_v7  ;;  %v1789_v51 = vpop.f32.mrf.mxu2  ;;  %v1778_v0 = vpop.f32.mrf.mxu1  ;;  %v3564_v23 = vunpack.c.h.bf16 %v3664_v20  ;;  %v3563_v26 = vunpack.c.l.bf16 %v3664_v20 }
 0x110   :  { %2153 = vmatpush.msra.mxu0 %v3555_v37  ;;  %2173 = vmatpush.msra.mxu1 %v3587_v27  ;;  %v3674_v27 = vld [vmem:[%s3971_s3 + $0x90] sm:$0xff]  }
 0x111   :  { %2192 = vmatpush.msra.mxu2 %v3620_v36  ;;  %v1777_v63 = vadd.f32 %v1776_v41, %v1764_v50  ;;  %v3603_v30 = vunpack.c.l.bf16 %v3674_v27  ;;  %v3672_v36 = vld [vmem:[%s3971_s3 + $0x80] sm:$0xff]  }
 0x112   :  { %2154 = vmatpush.msra.mxu0 %v3552_v40  ;;  %2174 = vmatpush.msra.mxu1 %v3584_v29  ;;  %v3604_v40 = vunpack.c.h.bf16 %v3674_v27  ;;  %v3595_v41 = vunpack.c.l.bf16 %v3672_v36 }
 0x113   :  { %2193 = vmatpush.msra.mxu2 %v3619_v42  ;;  %v1790_v11 = vadd.f32 %v1789_v51, %v1777_v63  ;;  %v3931_v42 = vld [vmem:[%s3970_s2] sm:$0xf] }
 0x114   :  { %2155 = vmatpush.msra.mxu0 %v3551_v38  ;;  %2175 = vmatpush.msra.mxu1 %v3583_v28  ;;  %v3673_v38 = vld [vmem:[%s3971_s3 + $0x88] sm:$0xff]  }
 0x115   :  { %2194 = vmatpush.msra.mxu2 %v3616_v52  ;;  %v1803_v21 = vadd.f32 %v1802_v55, %v1790_v11  ;;  %v3600_v31 = vunpack.c.h.bf16 %v3673_v38  ;;  %v3599_v28 = vunpack.c.l.bf16 %v3673_v38  ;;  %v3683_v11 = vld [vmem:[%s3971_s3 + $0xd8] sm:$0xff]  }
 0x116   :  { %2156 = vmatpush.msra.mxu0 %v3548_v39  ;;  %2176 = vmatpush.msra.mxu1 %v3580_v43  ;;  %v1804_v18 = vpop.f32.mrf.mxu3  ;;  %v3596_v39 = vunpack.c.h.bf16 %v3672_v36  ;;  %v312_v43 = vperm.slane %v3931_v42, 2 }
 0x117   :  { %2195 = vmatpush.msra.mxu2 %v3615_v56  ;;  %v1791_v14 = vpop.f32.mrf.mxu2  ;;  %v2015_v37 = vmax.f32 %v1803_v21, 0.0  ;;  %v3656_v56 = vunpack.c.h.bf16 %v3687_v54 }
 0x118   :  { %2157 = vmatpush.msra.mxu0 %v3547_v45  ;;  %2177 = vmatpush.msra.mxu1 %v3579_v47  ;;  %v3640_v14 = vunpack.c.h.bf16 %v3683_v11 }
 0x119   :  { %2196 = vmatpush.msra.mxu2 %v3612_v60  ;;  %v3686_v60 = vld [vmem:[%s3971_s3 + $0xf0] sm:$0xff]   ;;  %2210 = vmatpush.msra.mxu3 %v3656_v56 }
 0x11a   :  { %2158 = vmatpush.msra.mxu0 %v3544_v49  ;;  %2178 = vmatpush.msra.mxu1 %v3576_v53  ;;  %v3651_v0 = vunpack.c.l.bf16 %v3686_v60 }
 0x11b   :  { %2197 = vmatpush.msra.mxu2 %v3611_v1  ;;  %2211 = vmatpush.msra.mxu3 %v3655_v59 }
 0x11c   :  { %2159 = vmatpush.msra.mxu0 %v3543_v58  ;;  %2179 = vmatpush.msra.mxu1 %v3575_v61  ;;  %v3652_v61 = vunpack.c.h.bf16 %v3686_v60 }
 0x11d   :  { %2198 = vmatpush.msra.mxu2 %v3608_v10 }
 0x11e   :  { %2160 = vmatpush.msra.mxu0 %v3540_v8  ;;  %2180 = vmatpush.msra.mxu1 %v3572_v2  ;;  %v3685_v2 = vld [vmem:[%s3971_s3 + $0xe8] sm:$0xff]  }
 0x11f   :  { %2199 = vmatpush.msra.mxu2 %v3607_v16  ;;  %2212 = vmatpush.msra.mxu3 %v3652_v61  ;;  %v3648_v3 = vunpack.c.h.bf16 %v3685_v2  ;;  %v3647_v25 = vunpack.c.l.bf16 %v3685_v2  ;;  %v3639_v16 = vunpack.c.l.bf16 %v3683_v11 }
 0x120   :  { %2161 = vmatpush.msra.mxu0 %v3539_v9  ;;  %2181 = vmatpush.msra.mxu1 %v3571_v5  ;;  %v3684_v9 = vld [vmem:[%s3971_s3 + $0xe0] sm:$0xff]  }
 0x121   :  { %2200 = vmatpush.msra.mxu2 %v3604_v40  ;;  %2213 = vmatpush.msra.mxu3 %v3651_v0  ;;  %v3644_v10 = vunpack.c.h.bf16 %v3684_v9  ;;  %v313_v40 = vperm.slane %v3931_v42, 3 }
 0x122   :  { %2162 = vmatpush.msra.mxu0 %v3536_v12  ;;  %2182 = vmatpush.msra.mxu1 %v3568_v6  ;;  %v3643_v12 = vunpack.c.l.bf16 %v3684_v9  ;;  %v3682_v6 = vld [vmem:[%s3971_s3 + $0xd0] sm:$0xff]  }
 0x123   :  { %2201 = vmatpush.msra.mxu2 %v3603_v30  ;;  %2214 = vmatpush.msra.mxu3 %v3648_v3  ;;  %v3636_v17 = vunpack.c.h.bf16 %v3682_v6  ;;  %v3635_v18 = vunpack.c.l.bf16 %v3682_v6 }
 0x124   :  { %2163 = vmatpush.msra.mxu0 %v3535_v19  ;;  %2183 = vmatpush.msra.mxu1 %v3567_v4  ;;  %v3681_v4 = vld [vmem:[%s3971_s3 + $0xc8] sm:$0xff]  }
 0x125   :  { %2202 = vmatpush.msra.mxu2 %v3600_v31  ;;  %2215 = vmatpush.msra.mxu3 %v3647_v25  ;;  %v3632_v21 = vunpack.c.h.bf16 %v3681_v4 }
 0x126   :  { %2164 = vmatpush.msra.mxu0 %v3532_v22  ;;  %2184 = vmatpush.msra.mxu1 %v3564_v23  ;;  %v1815_v34 = vpop.f32.mrf.mxu0  ;;  %v1828_v29 = vpop.f32.mrf.mxu1  ;;  %v3631_v23 = vunpack.c.l.bf16 %v3681_v4 }
 0x127   :  { %2203 = vmatpush.msra.mxu2 %v3599_v28  ;;  %v1816_v46 = vadd.f32 %v1815_v34, %v312_v43  ;;  %2216 = vmatpush.msra.mxu3 %v3644_v10 }
 0x128   :  { %2165 = vmatpush.msra.mxu0 %v3531_v24  ;;  %2185 = vmatpush.msra.mxu1 %v3563_v26  ;;  %v3680_v26 = vld [vmem:[%s3971_s3 + $0xc0] sm:$0xff]  }
 0x129   :  { %2166 = vmatmul.f32.vlgmr.msra.gmra.mxu0 %v2014_v13  ;;  %2186 = vmatmul.f32.vlgmr.msra.gmra.mxu1 %v2015_v37  ;;  %v1829_v47 = vadd.f32 %v1828_v29, %v1816_v46  ;;  %v3628_v37 = vunpack.c.h.bf16 %v3680_v26  ;;  %v3627_v27 = vunpack.c.l.bf16 %v3680_v26 }
 0x12a   :  { %2204 = vmatpush.msra.mxu2 %v3596_v39  ;;  %2217 = vmatpush.msra.mxu3 %v3643_v12 }
 0x12c   :  { %2205 = vmatpush.msra.mxu2 %v3595_v41  ;;  %2218 = vmatpush.msra.mxu3 %v3640_v14 }
 0x12e   :  { %v1854_v32 = vpop.f32.mrf.mxu3  ;;  %v1817_v35 = vpop.f32.mrf.mxu0  ;;  %2219 = vmatpush.msra.mxu3 %v3639_v16 }
 0x12f   :  { %v1841_v48 = vpop.f32.mrf.mxu2  ;;  %v1830_v7 = vpop.f32.mrf.mxu1 }
 0x130   :  { %v1842_v33 = vadd.f32 %v1841_v48, %v1829_v47  ;;  %2220 = vmatpush.msra.mxu3 %v3636_v17 }
 0x132   :  { %v1855_v49 = vadd.f32 %v1854_v32, %v1842_v33  ;;  %2221 = vmatpush.msra.mxu3 %v3635_v18 }
 0x134   :  { %2222 = vmatpush.msra.mxu3 %v3632_v21 }
 0x136   :  { %v1856_v45 = vpop.f32.mrf.mxu3  ;;  %2223 = vmatpush.msra.mxu3 %v3631_v23 }
 0x137   :  { %v1843_v44 = vpop.f32.mrf.mxu2 }
 0x138   :  { %2224 = vmatpush.msra.mxu3 %v3628_v37 }
 0x13a   :  { %2225 = vmatpush.msra.mxu3 %v3627_v27 }
 0x146   :  { %v1867_v50 = vpop.f32.mrf.mxu0  ;;  %v1880_v52 = vpop.f32.mrf.mxu1 }
 0x147   :  { %v1868_v51 = vadd.f32 %v1867_v50, %v1855_v49  ;;  %v3691_v49 = vld [vmem:[%s3972_s4] ss:$0 sm:$0xff] }
 0x149   :  { %v1881_v53 = vadd.f32 %v1880_v52, %v1868_v51 }
 0x14e   :  { %v1906_v58 = vpop.f32.mrf.mxu3  ;;  %v1869_v8 = vpop.f32.mrf.mxu0 }
 0x14f   :  { %v1893_v55 = vpop.f32.mrf.mxu2  ;;  %v1882_v63 = vpop.f32.mrf.mxu1 }
 0x150   :  { %v1894_v57 = vadd.f32 %v1893_v55, %v1881_v53 }
 0x152   :  { %v1907_v62 = vadd.f32 %v1906_v58, %v1894_v57 }
 0x154   :  { %v2016_v1 = vmax.f32 %v1907_v62, 0.0 }
 0x156   :  { %2206 = vmatmul.f32.vlgmr.msra.gmra.mxu2 %v2016_v1  ;;  %v1908_v5 = vpop.f32.mrf.mxu3 }
 0x157   :  { %v1895_v15 = vpop.f32.mrf.mxu2 }
 0x166   :  { %v1919_v19 = vpop.f32.mrf.mxu0  ;;  %v1932_v20 = vpop.f32.mrf.mxu1 }
 0x167   :  { %v1920_v38 = vadd.f32 %v1919_v19, %v313_v40 }
 0x169   :  { %v1933_v48 = vadd.f32 %v1932_v20, %v1920_v38 }
 0x16e   :  { %v1958_v24 = vpop.f32.mrf.mxu3  ;;  %v1921_v13 = vpop.f32.mrf.mxu0 }
 0x16f   :  { %v1945_v22 = vpop.f32.mrf.mxu2  ;;  %v1934_v34 = vpop.f32.mrf.mxu1 }
 0x170   :  { %v1946_v31 = vadd.f32 %v1945_v22, %v1933_v48 }
 0x172   :  { %v1959_v32 = vadd.f32 %v1958_v24, %v1946_v31 }
 0x176   :  { %v1960_v30 = vpop.f32.mrf.mxu3 }
 0x177   :  { %v1947_v29 = vpop.f32.mrf.mxu2 }
 0x186   :  { %v1971_v28 = vpop.f32.mrf.mxu0  ;;  %v1984_v35 = vpop.f32.mrf.mxu1 }
 0x187   :  { %v1972_v36 = vadd.f32 %v1971_v28, %v1959_v32 }
 0x189   :  { %v1985_v7 = vadd.f32 %v1984_v35, %v1972_v36 }
 0x18e   :  { %v1997_v39 = vpop.f32.mrf.mxu2  ;;  %v2010_v43 = vpop.f32.mrf.mxu3 }
 0x18f   :  { %v1998_v41 = vadd.f32 %v1997_v39, %v1985_v7  ;;  %v1973_v44 = vpop.f32.mrf.mxu0  ;;  %v1986_v45 = vpop.f32.mrf.mxu1 }
 0x191   :  { %v2011_v46 = vadd.f32 %v2010_v43, %v1998_v41 }
 0x193   :  { %v2017_v47 = vmax.f32 %v2011_v46, 0.0 }
 0x195   :  { %2226 = vmatmul.f32.vlgmr.msra.gmra.mxu3 %v2017_v47 }
 0x196   :  { %v1999_v33 = vpop.f32.mrf.mxu2  ;;  %v2012_v42 = vpop.f32.mrf.mxu3 }
 0x1a6   :  { %v2167_v50 = vpop.f32.mrf.mxu0  ;;  %v2187_v52 = vpop.f32.mrf.mxu1 }
 0x1a7   :  { %v2168_v51 = vadd.f32 %v3691_v49, %v2167_v50 }
 0x1a9   :  { %v2188_v54 = vadd.f32 %v2187_v52, %v2168_v51 }
 0x1d9   :  { %v2207_v53 = vpop.f32.mrf.mxu2 }
 0x1da   :  { %v2208_v55 = vadd.f32 %v2207_v53, %v2188_v54 }
 0x218   :  { %v2227_v56 = vpop.f32.mrf.mxu3 }
 0x219   :  { %v2228_v57 = vadd.f32 %v2227_v56, %v2208_v55 }
 0x21b   :  { %v2231_v58 = vsel %vm2230_vm0, %v2228_v57, -inf }
 0x21c   :  { %2232 = vmax.xlane.f32.xlu0 %v2231_v58 }
 0x28f   :  { %v2233_v59 = vpop.xlane.xlu0 %2232 }
 0x290   :  { %v2234_v60 = vsub.f32 %v2228_v57, %v2233_v59 }
 0x292   :  { %v2235_v61 = vmul.f32 1.442695, %v2234_v60 }
 0x294   :  { %3692 = vpow2.f32 %v2235_v61 }
 0x29a   :  { %v3693_v62 = vpop.eup %3692 }
 0x29b   :  { %v2237_v8 = vsel %vm2230_vm0, %v3693_v62, 0.0 }
 0x29c   :  { %2238 = vadd.xlane.f32.xlu0 %v2237_v8 }
 0x30f   :  { %v2239_v63 = vpop.xlane.xlu0 %2238 }
 0x310   :  { %3694 = vlog2.f32 %v2239_v63 }
 0x316   :  { %v3695_v0 = vpop.eup %3694 }
 0x317   :  { %v2241_v1 = vmul.f32 0.6931472, %v3695_v0 }
 0x319   :  { %v2242_v2 = vsub.f32 %v2234_v60, %v2241_v1 }
 0x31b   :  { %2243 = vst.msk [vmem:[%s3973_s5] sm:$0xff] %vm2230_vm0, %v2242_v2 }
 0x31c   :  { %2248 = vsyncpa [#allocation3], 1 }

</bundles_post_ra>
